<compile_context>
chip_gen: v7x
topology: tpu7x:2x2x1
jax: 0.10.0
libtpu: 0.0.40
codegen_flags: <defaults>
</compile_context>

<pallas_src>
import jax
import jax.numpy as jnp
from jax.experimental import pallas as pl
from jax.experimental.pallas import tpu as pltpu

# ---------------- config (small synthetic shapes) ----------------
B = 2              # batch (sentence pairs)
S = 8              # max sequence length (tokenizer padding='max_length')
D = 32             # transformer hidden size == transformer_dim
H = 2              # attention heads
DH = D // H        # head dim
F = 64             # transformer FFN dim
L = 2              # encoder layers
V = 100            # vocab size
VPAD = 128         # padded embedding-table rows (V + S = 108 -> 128, lane/sublane aligned)
MLP_HIDDEN = 128   # hidden_dims = [MLP_HIDDEN]
BERT_EPS = 1e-12
LN_EPS = 1e-5      # torch.nn.LayerNorm default

_SQRT_2_OVER_PI = 0.7978845608028654


def _layernorm(x, g, b, eps):
    mu = jnp.mean(x, axis=-1, keepdims=True)
    var = jnp.mean((x - mu) ** 2, axis=-1, keepdims=True)
    return (x - mu) * jax.lax.rsqrt(var + eps) * g + b


def _gelu_tanh(x):
    # tanh-approximate GELU: runs on the (otherwise idle) EUP instead of a long
    # erf polynomial on the busiest VPU slot (review item).
    return 0.5 * x * (1.0 + jnp.tanh(_SQRT_2_OVER_PI * (x + 0.044715 * x * x * x)))


# ---------------- fused forward kernel (one sentence-pair group / program) ---
def make_kernel(P):
    """Kernel processing P sentence pairs (2*P sentences) per grid step."""
    NSp = 2 * P          # sentences in this program
    NRp = NSp * S        # token rows in this program

    def kernel(idx_ref, amask_ref, emb_ref, ln_e_ref, w_qkv_ref, w_o_ref,
               w_f1_ref, w_f2_ref, vecs_ref, head_w1_ref, head_vec_ref, out_ref):
        # ---- embedding gather via one-hot matmul (word + positional in one shot)
        idx = idx_ref[...]                                     # (P, 2S, 2) int32
        tok = idx[:, :, 0:1].reshape(NRp, 1)                   # token row
        pos = idx[:, :, 1:2].reshape(NRp, 1)                   # V + position row
        cols = jax.lax.broadcasted_iota(jnp.int32, (NRp, VPAD), 1)
        onehot = ((cols == tok) | (cols == pos)).astype(jnp.float32)
        x = jnp.dot(onehot, emb_ref[...],                      # (NRp, D)
                    preferred_element_type=jnp.float32)

        ln_e = ln_e_ref[...]                                   # (2, D)
        h = _layernorm(x, ln_e[0:1, :], ln_e[1:2, :], BERT_EPS)

        # additive attention mask replicated per head, hoisted out of the layer loop
        amask = amask_ref[...].reshape(NSp, S)                 # (NSp, S)
        neg_all = jnp.concatenate([amask] * H, axis=0)[:, None, :]   # (H*NSp, 1, S)
        inv_sqrt_dh = 1.0 / (DH ** 0.5)

        for l in range(L):                                     # static unroll
            w_qkv = w_qkv_ref[l]                               # (D, 3D)
            w_o = w_o_ref[l]                                   # (D, D)
            w_f1 = w_f1_ref[l]                                 # (D, F)
            w_f2 = w_f2_ref[l]                                 # (F, D)
            vec = vecs_ref[l]                                  # (8, 128): one vector per sublane row
            b_qkv = vec[0:1, 0:3 * D]
            b_o = vec[1:2, 0:D]
            b_f1 = vec[2:3, 0:F]
            b_f2 = vec[3:4, 0:D]
            ln1g = vec[4:5, 0:D]
            ln1b = vec[5:6, 0:D]
            ln2g = vec[6:7, 0:D]
            ln2b = vec[7:8, 0:D]

            # fused QKV projection: one (NRp, D) @ (D, 3D) matmul
            qkv = jnp.dot(h, w_qkv, preferred_element_type=jnp.float32) + b_qkv
            qkv = qkv.reshape(NSp, S, 3 * D)

            # fold heads into the batch dim: one softmax chain for all heads
            def head_batch(base):
                return jnp.concatenate(
                    [qkv[:, :, base + hd * DH: base + (hd + 1) * DH] for hd in range(H)],
                    axis=0)                                    # (H*NSp, S, DH)
            qh = head_batch(0)
            kh = head_batch(D)
            vh = head_batch(2 * D)

            s = jnp.einsum('bqd,bkd->bqk', qh, kh,
                           preferred_element_type=jnp.float32) * inv_sqrt_dh + neg_all
            s = s - jnp.max(s, axis=-1, keepdims=True)
            p = jnp.exp(s)
            p = p / jnp.sum(p, axis=-1, keepdims=True)         # exact divide (parity)
            ctx = jnp.einsum('bqk,bkd->bqd', p, vh,
                             preferred_element_type=jnp.float32)   # (H*NSp, S, DH)

            # output projection accumulated per head (no lane concat; Wo row
            # slices start at sublane multiples of DH=16, i.e. free views)
            attn = b_o
            for hd in range(H):
                ctx_h = ctx[hd * NSp:(hd + 1) * NSp].reshape(NRp, DH)
                attn = attn + jnp.dot(ctx_h, w_o[hd * DH:(hd + 1) * DH, :],
                                      preferred_element_type=jnp.float32)
            h = _layernorm(h + attn, ln1g, ln1b, BERT_EPS)

            f = jnp.dot(h, w_f1, preferred_element_type=jnp.float32) + b_f1
            f = _gelu_tanh(f)
            f = jnp.dot(f, w_f2, preferred_element_type=jnp.float32) + b_f2
            h = _layernorm(h + f, ln2g, ln2b, BERT_EPS)

        # ---- CLS rows only (classification_out = last_hidden_state[:, 0, :]) ----
        cls = h.reshape(NSp, S, D)[:, 0, :]                    # (NSp, D), pair-major
        cls = cls.reshape(P, 2, D)
        x1 = cls[:, 0, :]                                      # (P, D)
        x2 = cls[:, 1, :]                                      # (P, D)

        # ---- head: v = x1*x2 -> Linear -> ReLU -> LayerNorm -> Linear(1) -> Sigmoid
        hv = head_vec_ref[...]                                 # (5, MLP_HIDDEN)
        vmul = x1 * x2                                         # (P, D)
        # TODO(synk): nn.Dropout(0.1) layers are identity in eval mode; not applied.
        m = jnp.dot(vmul, head_w1_ref[...], preferred_element_type=jnp.float32) + hv[0:1]
        m = jnp.maximum(m, 0.0)                                # ReLU
        ln = _layernorm(m, hv[1:2], hv[2:3], LN_EPS)
        logit = jnp.sum(ln * hv[3:4], axis=-1, keepdims=True) + hv[4:5, 0:1]
        out_ref[...] = jax.nn.sigmoid(logit).reshape(1, P, 1)

    return kernel


# ---------------- pallas_call wrapper ---------------------------------------
PARAM_ORDER = ["emb_tab", "ln_e", "w_qkv", "w_o", "w_f1", "w_f2",
               "enc_vecs", "head_w1", "head_vec"]


def _full_spec(shape):
    nd = len(shape)
    return pl.BlockSpec(shape, lambda i, _nd=nd: (0,) * _nd)


def _pair_spec(shape, P):
    nrest = len(shape) - 1
    return pl.BlockSpec((P,) + tuple(shape[1:]),
                        lambda i, _n=nrest: (i,) + (0,) * _n)


def _pairs_per_program():
    # v7x has 2 TensorCores per chip: split the independent sentence pairs
    # across them.  Single-TC chips (v5e/v6e) keep one fused grid step.
    try:
        kind = jax.devices()[0].device_kind.lower()
        if "v7" in kind and B % 2 == 0:
            return B // 2
    except Exception:
        pass
    return B


def forward(ids1, mask1, ids2, mask2, params):
    """Whole sentence_transformer_bert forward pass in one pallas_call."""
    # gather indices, pair-major: last dim = [token id, V + position]
    ids = jnp.stack([ids1, ids2], axis=1).astype(jnp.int32)               # (B, 2, S)
    tok_col = ids.reshape(B, 2 * S)
    pos_col = jnp.broadcast_to(
        jnp.tile(jnp.arange(S, dtype=jnp.int32), 2)[None, :] + V, (B, 2 * S))
    gather_idx = jnp.stack([tok_col, pos_col], axis=-1)                   # (B, 2S, 2)
    # precomputed additive attention mask: 0 for valid keys, -1e9 for padding
    amask = (jnp.stack([mask1, mask2], axis=1).astype(jnp.float32) - 1.0) * 1e9  # (B,2,S)

    P = _pairs_per_program()
    G = B // P
    weights = [params[n] for n in PARAM_ORDER]

    in_specs = ([_pair_spec(gather_idx.shape, P), _pair_spec(amask.shape, P)]
                + [_full_spec(w.shape) for w in weights])
    out = pl.pallas_call(
        make_kernel(P),
        out_shape=jax.ShapeDtypeStruct((G, P, 1), jnp.float32),
        grid=(G,),
        in_specs=in_specs,
        out_specs=pl.BlockSpec((1, P, 1), lambda i: (i, 0, 0)),
        compiler_params=pltpu.CompilerParams(
            dimension_semantics=("parallel",) if G > 1 else ("arbitrary",)),
    )(gather_idx, amask, *weights)
    return out.reshape(B, 1)


# ---------------- parameter init (deterministic, synthetic, aligned packing) -
def init_params(key):
    keys = iter(jax.random.split(key, 8))

    def w(shape):
        return (0.02 * jax.random.normal(next(keys), shape)).astype(jnp.float32)

    # embedding table padded to 128 rows: word rows [0:V], positional rows [V:V+S]
    emb_tab = (jnp.zeros((VPAD, D), jnp.float32)
               .at[:V].set(w((V, D)))
               .at[V:V + S].set(w((S, D))))

    # embedding LayerNorm: row 0 = gamma, row 1 = beta
    ln_e = jnp.concatenate([jnp.ones((1, D)), jnp.zeros((1, D))],
                           axis=0).astype(jnp.float32)

    # per-layer weights, each its own lane-0-aligned ref
    w_qkv = w((L, D, 3 * D))      # [Wq | Wk | Wv], head-major within each D block
    w_o = w((L, D, D))
    w_f1 = w((L, D, F))
    w_f2 = w((L, F, D))

    # per-layer vector slab (L, 8, 128): one vector per sublane row at lane 0
    #   row 0: b_qkv (3D)  row 1: b_o (D)   row 2: b_f1 (F)  row 3: b_f2 (D)
    #   row 4: ln1 gamma   row 5: ln1 beta  row 6: ln2 gamma row 7: ln2 beta
    enc_vecs = (jnp.zeros((L, 8, 128), jnp.float32)
                .at[:, 4, :D].set(1.0)
                .at[:, 6, :D].set(1.0))

    # head: Linear(D, MLP_HIDDEN) + LayerNorm(MLP_HIDDEN) + Linear(MLP_HIDDEN, 1)
    head_w1 = w((D, MLP_HIDDEN))
    w2_row = w((MLP_HIDDEN, 1)).T                                          # (1, MLP_HIDDEN)
    head_vec = jnp.concatenate(
        [jnp.zeros((1, MLP_HIDDEN)),        # b1
         jnp.ones((1, MLP_HIDDEN)),         # LayerNorm gamma
         jnp.zeros((1, MLP_HIDDEN)),        # LayerNorm beta
         w2_row,                            # output weight as a row
         jnp.zeros((1, MLP_HIDDEN))],       # b2 stored at element [4, 0]
        axis=0).astype(jnp.float32)                                        # (5, 128)

    return dict(emb_tab=emb_tab, ln_e=ln_e, w_qkv=w_qkv, w_o=w_o, w_f1=w_f1,
                w_f2=w_f2, enc_vecs=enc_vecs, head_w1=head_w1, head_vec=head_vec)


if __name__ == "__main__":
    key = jax.random.PRNGKey(0)
    kp, k1, k2 = jax.random.split(key, 3)
    params = init_params(kp)

    # two "encoded sentences" per pair: token ids + attention masks
    ids1 = jax.random.randint(k1, (B, S), 0, V)
    ids2 = jax.random.randint(k2, (B, S), 0, V)
    lens1 = jnp.array([5, 8])
    lens2 = jnp.array([3, 6])
    mask1 = (jnp.arange(S)[None, :] < lens1[:, None]).astype(jnp.float32)  # (B, S)
    mask2 = (jnp.arange(S)[None, :] < lens2[:, None]).astype(jnp.float32)  # (B, S)

    out = forward(ids1, mask1, ids2, mask2, params)
    out = jax.block_until_ready(out)

    assert out.shape == (B, 1) and out.dtype == jnp.float32
    assert bool(jnp.all(jnp.isfinite(out)))
    assert bool(jnp.all((out > 0.0) & (out < 1.0)))
    print("KERNEL_OK")
</pallas_src>

<mosaic_0001>
module attributes {stable_mosaic.version = 11 : i64} {
  func.func @kernel(%arg0: i32, %arg1: memref<2x16x2xi32, #tpu.memory_space<vmem>>, %arg2: memref<2x2x8xf32, #tpu.memory_space<vmem>>, %arg3: memref<128x32xf32, #tpu.memory_space<vmem>>, %arg4: memref<2x32xf32, #tpu.memory_space<vmem>>, %arg5: memref<2x32x96xf32, #tpu.memory_space<vmem>>, %arg6: memref<2x32x32xf32, #tpu.memory_space<vmem>>, %arg7: memref<2x32x64xf32, #tpu.memory_space<vmem>>, %arg8: memref<2x64x32xf32, #tpu.memory_space<vmem>>, %arg9: memref<2x8x128xf32, #tpu.memory_space<vmem>>, %arg10: memref<32x128xf32, #tpu.memory_space<vmem>>, %arg11: memref<5x128xf32, #tpu.memory_space<vmem>>, %arg12: memref<1x2x1xf32, #tpu.memory_space<vmem>>) attributes {dimension_semantics = [#tpu.dimension_semantics<arbitrary>], iteration_bounds = array<i64: 1>, scalar_prefetch = 0 : i64, scratch_operands = 0 : i64, tpu.core_type = #tpu.core_type<tc>, window_params = [{transform_indices = @transform_0, window_bounds = array<i64: 2, 16, 2>}, {transform_indices = @transform_1, window_bounds = array<i64: 2, 2, 8>}, {pipeline_mode = #tpu.pipeline_mode<synchronous>, transform_indices = @transform_2, window_bounds = array<i64: 128, 32>}, {pipeline_mode = #tpu.pipeline_mode<synchronous>, transform_indices = @transform_3, window_bounds = array<i64: 2, 32>}, {pipeline_mode = #tpu.pipeline_mode<synchronous>, transform_indices = @transform_4, window_bounds = array<i64: 2, 32, 96>}, {pipeline_mode = #tpu.pipeline_mode<synchronous>, transform_indices = @transform_5, window_bounds = array<i64: 2, 32, 32>}, {pipeline_mode = #tpu.pipeline_mode<synchronous>, transform_indices = @transform_6, window_bounds = array<i64: 2, 32, 64>}, {pipeline_mode = #tpu.pipeline_mode<synchronous>, transform_indices = @transform_7, window_bounds = array<i64: 2, 64, 32>}, {pipeline_mode = #tpu.pipeline_mode<synchronous>, transform_indices = @transform_8, window_bounds = array<i64: 2, 8, 128>}, {pipeline_mode = #tpu.pipeline_mode<synchronous>, transform_indices = @transform_9, window_bounds = array<i64: 32, 128>}, {pipeline_mode = #tpu.pipeline_mode<synchronous>, transform_indices = @transform_10, window_bounds = array<i64: 5, 128>}, {transform_indices = @transform_11, window_bounds = array<i64: 1, 2, 1>}]} {
    %c0 = arith.constant 0 : index
    %c0_0 = arith.constant 0 : index
    %c0_1 = arith.constant 0 : index
    %0 = vector.load %arg1[%c0, %c0_0, %c0_1] : memref<2x16x2xi32, #tpu.memory_space<vmem>>, vector<2x16x2xi32>
    %1 = vector.extract_strided_slice %0 {offsets = [0, 0, 0], sizes = [2, 16, 1], strides = [1, 1, 1]} : vector<2x16x2xi32> to vector<2x16x1xi32>
    %2 = vector.shape_cast %1 : vector<2x16x1xi32> to vector<32x1xi32>
    %3 = vector.extract_strided_slice %0 {offsets = [0, 0, 1], sizes = [2, 16, 1], strides = [1, 1, 1]} : vector<2x16x2xi32> to vector<2x16x1xi32>
    %4 = vector.shape_cast %3 : vector<2x16x1xi32> to vector<32x1xi32>
    %5 = tpu.iota {dimensions = array<i32: 1>} : vector<32x128xi32>
    %6 = vector.broadcast %2 : vector<32x1xi32> to vector<32x128xi32>
    %7 = arith.cmpi eq, %5, %6 : vector<32x128xi32>
    %8 = vector.broadcast %4 : vector<32x1xi32> to vector<32x128xi32>
    %9 = arith.cmpi eq, %5, %8 : vector<32x128xi32>
    %10 = arith.ori %7, %9 : vector<32x128xi1>
    %11 = arith.extui %10 : vector<32x128xi1> to vector<32x128xi32>
    %12 = arith.sitofp %11 : vector<32x128xi32> to vector<32x128xf32>
    %c0_2 = arith.constant 0 : index
    %c0_3 = arith.constant 0 : index
    %13 = vector.load %arg3[%c0_2, %c0_3] : memref<128x32xf32, #tpu.memory_space<vmem>>, vector<128x32xf32>
    %cst = arith.constant dense<0.000000e+00> : vector<32x32xf32>
    %14 = tpu.matmul %12, %13, %cst {dimension_numbers = #tpu.dot_dimension_numbers<[1], [0], [0], [1], [0, 0, 1, 1], [], []>} : vector<32x128xf32>, vector<128x32xf32>, vector<32x32xf32> -> vector<32x32xf32>
    %c0_4 = arith.constant 0 : index
    %c0_5 = arith.constant 0 : index
    %15 = vector.load %arg4[%c0_4, %c0_5] : memref<2x32xf32, #tpu.memory_space<vmem>>, vector<2x32xf32>
    %16 = vector.extract_strided_slice %15 {offsets = [0, 0], sizes = [1, 32], strides = [1, 1]} : vector<2x32xf32> to vector<1x32xf32>
    %17 = vector.extract_strided_slice %15 {offsets = [1, 0], sizes = [1, 32], strides = [1, 1]} : vector<2x32xf32> to vector<1x32xf32>
    %cst_6 = arith.constant dense<0.000000e+00> : vector<32xf32>
    %18 = vector.multi_reduction <add>, %14, %cst_6 [1] : vector<32x32xf32> to vector<32xf32>
    %19 = vector.shape_cast %18 : vector<32xf32> to vector<32x1xf32>
    %cst_7 = arith.constant 3.200000e+01 : f32
    %20 = vector.broadcast %cst_7 : f32 to vector<32x1xf32>
    %21 = arith.divf %19, %20 : vector<32x1xf32>
    %22 = vector.broadcast %21 : vector<32x1xf32> to vector<32x32xf32>
    %23 = arith.subf %14, %22 : vector<32x32xf32>
    %24 = arith.mulf %23, %23 : vector<32x32xf32>
    %cst_8 = arith.constant dense<0.000000e+00> : vector<32xf32>
    %25 = vector.multi_reduction <add>, %24, %cst_8 [1] : vector<32x32xf32> to vector<32xf32>
    %26 = vector.shape_cast %25 : vector<32xf32> to vector<32x1xf32>
    %cst_9 = arith.constant 3.200000e+01 : f32
    %27 = vector.broadcast %cst_9 : f32 to vector<32x1xf32>
    %28 = arith.divf %26, %27 : vector<32x1xf32>
    %29 = vector.broadcast %21 : vector<32x1xf32> to vector<32x32xf32>
    %30 = arith.subf %14, %29 : vector<32x32xf32>
    %cst_10 = arith.constant 9.99999996E-13 : f32
    %31 = vector.broadcast %cst_10 : f32 to vector<32x1xf32>
    %32 = arith.addf %28, %31 : vector<32x1xf32>
    %33 = math.rsqrt %32 : vector<32x1xf32>
    %34 = vector.broadcast %33 : vector<32x1xf32> to vector<32x32xf32>
    %35 = arith.mulf %30, %34 : vector<32x32xf32>
    %36 = vector.broadcast %16 : vector<1x32xf32> to vector<32x32xf32>
    %37 = arith.mulf %35, %36 : vector<32x32xf32>
    %38 = vector.broadcast %17 : vector<1x32xf32> to vector<32x32xf32>
    %39 = arith.addf %37, %38 : vector<32x32xf32>
    %c0_11 = arith.constant 0 : index
    %c0_12 = arith.constant 0 : index
    %c0_13 = arith.constant 0 : index
    %40 = vector.load %arg2[%c0_11, %c0_12, %c0_13] : memref<2x2x8xf32, #tpu.memory_space<vmem>>, vector<2x2x8xf32>
    %41 = vector.shape_cast %40 : vector<2x2x8xf32> to vector<4x8xf32>
    %42 = tpu.concatenate %41, %41 in 0 : vector<4x8xf32>, vector<4x8xf32> -> vector<8x8xf32>
    %43 = vector.shape_cast %42 : vector<8x8xf32> to vector<8x1x8xf32>
    %c0_14 = arith.constant 0 : index
    %c0_15 = arith.constant 0 : index
    %c0_16 = arith.constant 0 : index
    %44 = vector.load %arg5[%c0_14, %c0_15, %c0_16] : memref<2x32x96xf32, #tpu.memory_space<vmem>>, vector<1x32x96xf32>
    %45 = vector.shape_cast %44 : vector<1x32x96xf32> to vector<32x96xf32>
    %c0_17 = arith.constant 0 : index
    %c0_18 = arith.constant 0 : index
    %c0_19 = arith.constant 0 : index
    %46 = vector.load %arg6[%c0_17, %c0_18, %c0_19] : memref<2x32x32xf32, #tpu.memory_space<vmem>>, vector<1x32x32xf32>
    %47 = vector.shape_cast %46 : vector<1x32x32xf32> to vector<32x32xf32>
    %c0_20 = arith.constant 0 : index
    %c0_21 = arith.constant 0 : index
    %c0_22 = arith.constant 0 : index
    %48 = vector.load %arg7[%c0_20, %c0_21, %c0_22] : memref<2x32x64xf32, #tpu.memory_space<vmem>>, vector<1x32x64xf32>
    %49 = vector.shape_cast %48 : vector<1x32x64xf32> to vector<32x64xf32>
    %c0_23 = arith.constant 0 : index
    %c0_24 = arith.constant 0 : index
    %c0_25 = arith.constant 0 : index
    %50 = vector.load %arg8[%c0_23, %c0_24, %c0_25] : memref<2x64x32xf32, #tpu.memory_space<vmem>>, vector<1x64x32xf32>
    %51 = vector.shape_cast %50 : vector<1x64x32xf32> to vector<64x32xf32>
    %c0_26 = arith.constant 0 : index
    %c0_27 = arith.constant 0 : index
    %c0_28 = arith.constant 0 : index
    %52 = vector.load %arg9[%c0_26, %c0_27, %c0_28] : memref<2x8x128xf32, #tpu.memory_space<vmem>>, vector<1x8x128xf32>
    %53 = vector.shape_cast %52 : vector<1x8x128xf32> to vector<8x128xf32>
    %54 = vector.extract_strided_slice %53 {offsets = [0, 0], sizes = [1, 96], strides = [1, 1]} : vector<8x128xf32> to vector<1x96xf32>
    %55 = vector.extract_strided_slice %53 {offsets = [1, 0], sizes = [1, 32], strides = [1, 1]} : vector<8x128xf32> to vector<1x32xf32>
    %56 = vector.extract_strided_slice %53 {offsets = [2, 0], sizes = [1, 64], strides = [1, 1]} : vector<8x128xf32> to vector<1x64xf32>
    %57 = vector.extract_strided_slice %53 {offsets = [3, 0], sizes = [1, 32], strides = [1, 1]} : vector<8x128xf32> to vector<1x32xf32>
    %58 = vector.extract_strided_slice %53 {offsets = [4, 0], sizes = [1, 32], strides = [1, 1]} : vector<8x128xf32> to vector<1x32xf32>
    %59 = vector.extract_strided_slice %53 {offsets = [5, 0], sizes = [1, 32], strides = [1, 1]} : vector<8x128xf32> to vector<1x32xf32>
    %60 = vector.extract_strided_slice %53 {offsets = [6, 0], sizes = [1, 32], strides = [1, 1]} : vector<8x128xf32> to vector<1x32xf32>
    %61 = vector.extract_strided_slice %53 {offsets = [7, 0], sizes = [1, 32], strides = [1, 1]} : vector<8x128xf32> to vector<1x32xf32>
    %cst_29 = arith.constant dense<0.000000e+00> : vector<32x96xf32>
    %62 = tpu.matmul %39, %45, %cst_29 {dimension_numbers = #tpu.dot_dimension_numbers<[1], [0], [0], [1], [0, 0, 1, 1], [], []>} : vector<32x32xf32>, vector<32x96xf32>, vector<32x96xf32> -> vector<32x96xf32>
    %63 = vector.broadcast %54 : vector<1x96xf32> to vector<32x96xf32>
    %64 = arith.addf %62, %63 : vector<32x96xf32>
    %65 = vector.shape_cast %64 : vector<32x96xf32> to vector<4x8x96xf32>
    %66 = vector.extract_strided_slice %65 {offsets = [0, 0, 0], sizes = [4, 8, 16], strides = [1, 1, 1]} : vector<4x8x96xf32> to vector<4x8x16xf32>
    %67 = vector.extract_strided_slice %65 {offsets = [0, 0, 16], sizes = [4, 8, 16], strides = [1, 1, 1]} : vector<4x8x96xf32> to vector<4x8x16xf32>
    %68 = tpu.concatenate %66, %67 in 0 : vector<4x8x16xf32>, vector<4x8x16xf32> -> vector<8x8x16xf32>
    %69 = vector.extract_strided_slice %65 {offsets = [0, 0, 32], sizes = [4, 8, 16], strides = [1, 1, 1]} : vector<4x8x96xf32> to vector<4x8x16xf32>
    %70 = vector.extract_strided_slice %65 {offsets = [0, 0, 48], sizes = [4, 8, 16], strides = [1, 1, 1]} : vector<4x8x96xf32> to vector<4x8x16xf32>
    %71 = tpu.concatenate %69, %70 in 0 : vector<4x8x16xf32>, vector<4x8x16xf32> -> vector<8x8x16xf32>
    %72 = vector.extract_strided_slice %65 {offsets = [0, 0, 64], sizes = [4, 8, 16], strides = [1, 1, 1]} : vector<4x8x96xf32> to vector<4x8x16xf32>
    %73 = vector.extract_strided_slice %65 {offsets = [0, 0, 80], sizes = [4, 8, 16], strides = [1, 1, 1]} : vector<4x8x96xf32> to vector<4x8x16xf32>
    %74 = tpu.concatenate %72, %73 in 0 : vector<4x8x16xf32>, vector<4x8x16xf32> -> vector<8x8x16xf32>
    "tpu.trace_start"() <{level = 10 : i32, message = "bqd,bkd->bqk"}> : () -> ()
    %cst_30 = arith.constant dense<0.000000e+00> : vector<8x8x8xf32>
    %75 = tpu.matmul %68, %71, %cst_30 {dimension_numbers = #tpu.dot_dimension_numbers<[2], [2], [1], [1], [0, 0, 0, 1, 1, 1], [0], [0]>} : vector<8x8x16xf32>, vector<8x8x16xf32>, vector<8x8x8xf32> -> vector<8x8x8xf32>
    "tpu.trace_stop"() : () -> ()
    %cst_31 = arith.constant 2.500000e-01 : f32
    %76 = vector.broadcast %cst_31 : f32 to vector<8x8x8xf32>
    %77 = arith.mulf %75, %76 : vector<8x8x8xf32>
    %78 = vector.broadcast %43 : vector<8x1x8xf32> to vector<8x8x8xf32>
    %79 = arith.addf %77, %78 : vector<8x8x8xf32>
    %cst_32 = arith.constant dense<0xFF800000> : vector<8x8xf32>
    %80 = vector.multi_reduction <maximumf>, %79, %cst_32 [2] : vector<8x8x8xf32> to vector<8x8xf32>
    %81 = vector.shape_cast %80 : vector<8x8xf32> to vector<8x8x1xf32>
    %82 = vector.broadcast %81 : vector<8x8x1xf32> to vector<8x8x8xf32>
    %83 = arith.subf %79, %82 : vector<8x8x8xf32>
    %84 = math.exp %83 : vector<8x8x8xf32>
    %cst_33 = arith.constant dense<0.000000e+00> : vector<8x8xf32>
    %85 = vector.multi_reduction <add>, %84, %cst_33 [2] : vector<8x8x8xf32> to vector<8x8xf32>
    %86 = vector.shape_cast %85 : vector<8x8xf32> to vector<8x8x1xf32>
    %87 = vector.broadcast %86 : vector<8x8x1xf32> to vector<8x8x8xf32>
    %88 = arith.divf %84, %87 : vector<8x8x8xf32>
    "tpu.trace_start"() <{level = 10 : i32, message = "bqk,bkd->bqd"}> : () -> ()
    %cst_34 = arith.constant dense<0.000000e+00> : vector<8x8x16xf32>
    %89 = tpu.matmul %88, %74, %cst_34 {dimension_numbers = #tpu.dot_dimension_numbers<[2], [1], [1], [2], [0, 0, 0, 1, 1, 2], [0], [0]>} : vector<8x8x8xf32>, vector<8x8x16xf32>, vector<8x8x16xf32> -> vector<8x8x16xf32>
    "tpu.trace_stop"() : () -> ()
    %90 = vector.extract_strided_slice %89 {offsets = [0, 0, 0], sizes = [4, 8, 16], strides = [1, 1, 1]} : vector<8x8x16xf32> to vector<4x8x16xf32>
    %91 = vector.shape_cast %90 : vector<4x8x16xf32> to vector<32x16xf32>
    %92 = vector.extract_strided_slice %47 {offsets = [0, 0], sizes = [16, 32], strides = [1, 1]} : vector<32x32xf32> to vector<16x32xf32>
    %cst_35 = arith.constant dense<0.000000e+00> : vector<32x32xf32>
    %93 = tpu.matmul %91, %92, %cst_35 {dimension_numbers = #tpu.dot_dimension_numbers<[1], [0], [0], [1], [0, 0, 1, 1], [], []>} : vector<32x16xf32>, vector<16x32xf32>, vector<32x32xf32> -> vector<32x32xf32>
    %94 = vector.broadcast %55 : vector<1x32xf32> to vector<32x32xf32>
    %95 = arith.addf %94, %93 : vector<32x32xf32>
    %96 = vector.extract_strided_slice %89 {offsets = [4, 0, 0], sizes = [4, 8, 16], strides = [1, 1, 1]} : vector<8x8x16xf32> to vector<4x8x16xf32>
    %97 = vector.shape_cast %96 : vector<4x8x16xf32> to vector<32x16xf32>
    %98 = vector.extract_strided_slice %47 {offsets = [16, 0], sizes = [16, 32], strides = [1, 1]} : vector<32x32xf32> to vector<16x32xf32>
    %cst_36 = arith.constant dense<0.000000e+00> : vector<32x32xf32>
    %99 = tpu.matmul %97, %98, %cst_36 {dimension_numbers = #tpu.dot_dimension_numbers<[1], [0], [0], [1], [0, 0, 1, 1], [], []>} : vector<32x16xf32>, vector<16x32xf32>, vector<32x32xf32> -> vector<32x32xf32>
    %100 = arith.addf %95, %99 : vector<32x32xf32>
    %101 = arith.addf %39, %100 : vector<32x32xf32>
    %cst_37 = arith.constant dense<0.000000e+00> : vector<32xf32>
    %102 = vector.multi_reduction <add>, %101, %cst_37 [1] : vector<32x32xf32> to vector<32xf32>
    %103 = vector.shape_cast %102 : vector<32xf32> to vector<32x1xf32>
    %cst_38 = arith.constant 3.200000e+01 : f32
    %104 = vector.broadcast %cst_38 : f32 to vector<32x1xf32>
    %105 = arith.divf %103, %104 : vector<32x1xf32>
    %106 = vector.broadcast %105 : vector<32x1xf32> to vector<32x32xf32>
    %107 = arith.subf %101, %106 : vector<32x32xf32>
    %108 = arith.mulf %107, %107 : vector<32x32xf32>
    %cst_39 = arith.constant dense<0.000000e+00> : vector<32xf32>
    %109 = vector.multi_reduction <add>, %108, %cst_39 [1] : vector<32x32xf32> to vector<32xf32>
    %110 = vector.shape_cast %109 : vector<32xf32> to vector<32x1xf32>
    %cst_40 = arith.constant 3.200000e+01 : f32
    %111 = vector.broadcast %cst_40 : f32 to vector<32x1xf32>
    %112 = arith.divf %110, %111 : vector<32x1xf32>
    %113 = vector.broadcast %105 : vector<32x1xf32> to vector<32x32xf32>
    %114 = arith.subf %101, %113 : vector<32x32xf32>
    %cst_41 = arith.constant 9.99999996E-13 : f32
    %115 = vector.broadcast %cst_41 : f32 to vector<32x1xf32>
    %116 = arith.addf %112, %115 : vector<32x1xf32>
    %117 = math.rsqrt %116 : vector<32x1xf32>
    %118 = vector.broadcast %117 : vector<32x1xf32> to vector<32x32xf32>
    %119 = arith.mulf %114, %118 : vector<32x32xf32>
    %120 = vector.broadcast %58 : vector<1x32xf32> to vector<32x32xf32>
    %121 = arith.mulf %119, %120 : vector<32x32xf32>
    %122 = vector.broadcast %59 : vector<1x32xf32> to vector<32x32xf32>
    %123 = arith.addf %121, %122 : vector<32x32xf32>
    %cst_42 = arith.constant dense<0.000000e+00> : vector<32x64xf32>
    %124 = tpu.matmul %123, %49, %cst_42 {dimension_numbers = #tpu.dot_dimension_numbers<[1], [0], [0], [1], [0, 0, 1, 1], [], []>} : vector<32x32xf32>, vector<32x64xf32>, vector<32x64xf32> -> vector<32x64xf32>
    %125 = vector.broadcast %56 : vector<1x64xf32> to vector<32x64xf32>
    %126 = arith.addf %124, %125 : vector<32x64xf32>
    %cst_43 = arith.constant 5.000000e-01 : f32
    %127 = vector.broadcast %cst_43 : f32 to vector<32x64xf32>
    %128 = arith.mulf %127, %126 : vector<32x64xf32>
    %cst_44 = arith.constant 4.471500e-02 : f32
    %129 = vector.broadcast %cst_44 : f32 to vector<32x64xf32>
    %130 = arith.mulf %129, %126 : vector<32x64xf32>
    %131 = arith.mulf %130, %126 : vector<32x64xf32>
    %132 = arith.mulf %131, %126 : vector<32x64xf32>
    %133 = arith.addf %126, %132 : vector<32x64xf32>
    %cst_45 = arith.constant 0.797884583 : f32
    %134 = vector.broadcast %cst_45 : f32 to vector<32x64xf32>
    %135 = arith.mulf %134, %133 : vector<32x64xf32>
    %136 = math.tanh %135 : vector<32x64xf32>
    %cst_46 = arith.constant 1.000000e+00 : f32
    %137 = vector.broadcast %cst_46 : f32 to vector<32x64xf32>
    %138 = arith.addf %137, %136 : vector<32x64xf32>
    %139 = arith.mulf %128, %138 : vector<32x64xf32>
    %cst_47 = arith.constant dense<0.000000e+00> : vector<32x32xf32>
    %140 = tpu.matmul %139, %51, %cst_47 {dimension_numbers = #tpu.dot_dimension_numbers<[1], [0], [0], [1], [0, 0, 1, 1], [], []>} : vector<32x64xf32>, vector<64x32xf32>, vector<32x32xf32> -> vector<32x32xf32>
    %141 = vector.broadcast %57 : vector<1x32xf32> to vector<32x32xf32>
    %142 = arith.addf %140, %141 : vector<32x32xf32>
    %143 = arith.addf %123, %142 : vector<32x32xf32>
    %cst_48 = arith.constant dense<0.000000e+00> : vector<32xf32>
    %144 = vector.multi_reduction <add>, %143, %cst_48 [1] : vector<32x32xf32> to vector<32xf32>
    %145 = vector.shape_cast %144 : vector<32xf32> to vector<32x1xf32>
    %cst_49 = arith.constant 3.200000e+01 : f32
    %146 = vector.broadcast %cst_49 : f32 to vector<32x1xf32>
    %147 = arith.divf %145, %146 : vector<32x1xf32>
    %148 = vector.broadcast %147 : vector<32x1xf32> to vector<32x32xf32>
    %149 = arith.subf %143, %148 : vector<32x32xf32>
    %150 = arith.mulf %149, %149 : vector<32x32xf32>
    %cst_50 = arith.constant dense<0.000000e+00> : vector<32xf32>
    %151 = vector.multi_reduction <add>, %150, %cst_50 [1] : vector<32x32xf32> to vector<32xf32>
    %152 = vector.shape_cast %151 : vector<32xf32> to vector<32x1xf32>
    %cst_51 = arith.constant 3.200000e+01 : f32
    %153 = vector.broadcast %cst_51 : f32 to vector<32x1xf32>
    %154 = arith.divf %152, %153 : vector<32x1xf32>
    %155 = vector.broadcast %147 : vector<32x1xf32> to vector<32x32xf32>
    %156 = arith.subf %143, %155 : vector<32x32xf32>
    %cst_52 = arith.constant 9.99999996E-13 : f32
    %157 = vector.broadcast %cst_52 : f32 to vector<32x1xf32>
    %158 = arith.addf %154, %157 : vector<32x1xf32>
    %159 = math.rsqrt %158 : vector<32x1xf32>
    %160 = vector.broadcast %159 : vector<32x1xf32> to vector<32x32xf32>
    %161 = arith.mulf %156, %160 : vector<32x32xf32>
    %162 = vector.broadcast %60 : vector<1x32xf32> to vector<32x32xf32>
    %163 = arith.mulf %161, %162 : vector<32x32xf32>
    %164 = vector.broadcast %61 : vector<1x32xf32> to vector<32x32xf32>
    %165 = arith.addf %163, %164 : vector<32x32xf32>
    %c1 = arith.constant 1 : index
    %c0_53 = arith.constant 0 : index
    %c0_54 = arith.constant 0 : index
    %166 = vector.load %arg5[%c1, %c0_53, %c0_54] : memref<2x32x96xf32, #tpu.memory_space<vmem>>, vector<1x32x96xf32>
    %167 = vector.shape_cast %166 : vector<1x32x96xf32> to vector<32x96xf32>
    %c1_55 = arith.constant 1 : index
    %c0_56 = arith.constant 0 : index
    %c0_57 = arith.constant 0 : index
    %168 = vector.load %arg6[%c1_55, %c0_56, %c0_57] : memref<2x32x32xf32, #tpu.memory_space<vmem>>, vector<1x32x32xf32>
    %169 = vector.shape_cast %168 : vector<1x32x32xf32> to vector<32x32xf32>
    %c1_58 = arith.constant 1 : index
    %c0_59 = arith.constant 0 : index
    %c0_60 = arith.constant 0 : index
    %170 = vector.load %arg7[%c1_58, %c0_59, %c0_60] : memref<2x32x64xf32, #tpu.memory_space<vmem>>, vector<1x32x64xf32>
    %171 = vector.shape_cast %170 : vector<1x32x64xf32> to vector<32x64xf32>
    %c1_61 = arith.constant 1 : index
    %c0_62 = arith.constant 0 : index
    %c0_63 = arith.constant 0 : index
    %172 = vector.load %arg8[%c1_61, %c0_62, %c0_63] : memref<2x64x32xf32, #tpu.memory_space<vmem>>, vector<1x64x32xf32>
    %173 = vector.shape_cast %172 : vector<1x64x32xf32> to vector<64x32xf32>
    %c1_64 = arith.constant 1 : index
    %c0_65 = arith.constant 0 : index
    %c0_66 = arith.constant 0 : index
    %174 = vector.load %arg9[%c1_64, %c0_65, %c0_66] : memref<2x8x128xf32, #tpu.memory_space<vmem>>, vector<1x8x128xf32>
    %175 = vector.shape_cast %174 : vector<1x8x128xf32> to vector<8x128xf32>
    %176 = vector.extract_strided_slice %175 {offsets = [0, 0], sizes = [1, 96], strides = [1, 1]} : vector<8x128xf32> to vector<1x96xf32>
    %177 = vector.extract_strided_slice %175 {offsets = [1, 0], sizes = [1, 32], strides = [1, 1]} : vector<8x128xf32> to vector<1x32xf32>
    %178 = vector.extract_strided_slice %175 {offsets = [2, 0], sizes = [1, 64], strides = [1, 1]} : vector<8x128xf32> to vector<1x64xf32>
    %179 = vector.extract_strided_slice %175 {offsets = [3, 0], sizes = [1, 32], strides = [1, 1]} : vector<8x128xf32> to vector<1x32xf32>
    %180 = vector.extract_strided_slice %175 {offsets = [4, 0], sizes = [1, 32], strides = [1, 1]} : vector<8x128xf32> to vector<1x32xf32>
    %181 = vector.extract_strided_slice %175 {offsets = [5, 0], sizes = [1, 32], strides = [1, 1]} : vector<8x128xf32> to vector<1x32xf32>
    %182 = vector.extract_strided_slice %175 {offsets = [6, 0], sizes = [1, 32], strides = [1, 1]} : vector<8x128xf32> to vector<1x32xf32>
    %183 = vector.extract_strided_slice %175 {offsets = [7, 0], sizes = [1, 32], strides = [1, 1]} : vector<8x128xf32> to vector<1x32xf32>
    %cst_67 = arith.constant dense<0.000000e+00> : vector<32x96xf32>
    %184 = tpu.matmul %165, %167, %cst_67 {dimension_numbers = #tpu.dot_dimension_numbers<[1], [0], [0], [1], [0, 0, 1, 1], [], []>} : vector<32x32xf32>, vector<32x96xf32>, vector<32x96xf32> -> vector<32x96xf32>
    %185 = vector.broadcast %176 : vector<1x96xf32> to vector<32x96xf32>
    %186 = arith.addf %184, %185 : vector<32x96xf32>
    %187 = vector.shape_cast %186 : vector<32x96xf32> to vector<4x8x96xf32>
    %188 = vector.extract_strided_slice %187 {offsets = [0, 0, 0], sizes = [4, 8, 16], strides = [1, 1, 1]} : vector<4x8x96xf32> to vector<4x8x16xf32>
    %189 = vector.extract_strided_slice %187 {offsets = [0, 0, 16], sizes = [4, 8, 16], strides = [1, 1, 1]} : vector<4x8x96xf32> to vector<4x8x16xf32>
    %190 = tpu.concatenate %188, %189 in 0 : vector<4x8x16xf32>, vector<4x8x16xf32> -> vector<8x8x16xf32>
    %191 = vector.extract_strided_slice %187 {offsets = [0, 0, 32], sizes = [4, 8, 16], strides = [1, 1, 1]} : vector<4x8x96xf32> to vector<4x8x16xf32>
    %192 = vector.extract_strided_slice %187 {offsets = [0, 0, 48], sizes = [4, 8, 16], strides = [1, 1, 1]} : vector<4x8x96xf32> to vector<4x8x16xf32>
    %193 = tpu.concatenate %191, %192 in 0 : vector<4x8x16xf32>, vector<4x8x16xf32> -> vector<8x8x16xf32>
    %194 = vector.extract_strided_slice %187 {offsets = [0, 0, 64], sizes = [4, 8, 16], strides = [1, 1, 1]} : vector<4x8x96xf32> to vector<4x8x16xf32>
    %195 = vector.extract_strided_slice %187 {offsets = [0, 0, 80], sizes = [4, 8, 16], strides = [1, 1, 1]} : vector<4x8x96xf32> to vector<4x8x16xf32>
    %196 = tpu.concatenate %194, %195 in 0 : vector<4x8x16xf32>, vector<4x8x16xf32> -> vector<8x8x16xf32>
    "tpu.trace_start"() <{level = 10 : i32, message = "bqd,bkd->bqk"}> : () -> ()
    %cst_68 = arith.constant dense<0.000000e+00> : vector<8x8x8xf32>
    %197 = tpu.matmul %190, %193, %cst_68 {dimension_numbers = #tpu.dot_dimension_numbers<[2], [2], [1], [1], [0, 0, 0, 1, 1, 1], [0], [0]>} : vector<8x8x16xf32>, vector<8x8x16xf32>, vector<8x8x8xf32> -> vector<8x8x8xf32>
    "tpu.trace_stop"() : () -> ()
    %cst_69 = arith.constant 2.500000e-01 : f32
    %198 = vector.broadcast %cst_69 : f32 to vector<8x8x8xf32>
    %199 = arith.mulf %197, %198 : vector<8x8x8xf32>
    %200 = vector.broadcast %43 : vector<8x1x8xf32> to vector<8x8x8xf32>
    %201 = arith.addf %199, %200 : vector<8x8x8xf32>
    %cst_70 = arith.constant dense<0xFF800000> : vector<8x8xf32>
    %202 = vector.multi_reduction <maximumf>, %201, %cst_70 [2] : vector<8x8x8xf32> to vector<8x8xf32>
    %203 = vector.shape_cast %202 : vector<8x8xf32> to vector<8x8x1xf32>
    %204 = vector.broadcast %203 : vector<8x8x1xf32> to vector<8x8x8xf32>
    %205 = arith.subf %201, %204 : vector<8x8x8xf32>
    %206 = math.exp %205 : vector<8x8x8xf32>
    %cst_71 = arith.constant dense<0.000000e+00> : vector<8x8xf32>
    %207 = vector.multi_reduction <add>, %206, %cst_71 [2] : vector<8x8x8xf32> to vector<8x8xf32>
    %208 = vector.shape_cast %207 : vector<8x8xf32> to vector<8x8x1xf32>
    %209 = vector.broadcast %208 : vector<8x8x1xf32> to vector<8x8x8xf32>
    %210 = arith.divf %206, %209 : vector<8x8x8xf32>
    "tpu.trace_start"() <{level = 10 : i32, message = "bqk,bkd->bqd"}> : () -> ()
    %cst_72 = arith.constant dense<0.000000e+00> : vector<8x8x16xf32>
    %211 = tpu.matmul %210, %196, %cst_72 {dimension_numbers = #tpu.dot_dimension_numbers<[2], [1], [1], [2], [0, 0, 0, 1, 1, 2], [0], [0]>} : vector<8x8x8xf32>, vector<8x8x16xf32>, vector<8x8x16xf32> -> vector<8x8x16xf32>
    "tpu.trace_stop"() : () -> ()
    %212 = vector.extract_strided_slice %211 {offsets = [0, 0, 0], sizes = [4, 8, 16], strides = [1, 1, 1]} : vector<8x8x16xf32> to vector<4x8x16xf32>
    %213 = vector.shape_cast %212 : vector<4x8x16xf32> to vector<32x16xf32>
    %214 = vector.extract_strided_slice %169 {offsets = [0, 0], sizes = [16, 32], strides = [1, 1]} : vector<32x32xf32> to vector<16x32xf32>
    %cst_73 = arith.constant dense<0.000000e+00> : vector<32x32xf32>
    %215 = tpu.matmul %213, %214, %cst_73 {dimension_numbers = #tpu.dot_dimension_numbers<[1], [0], [0], [1], [0, 0, 1, 1], [], []>} : vector<32x16xf32>, vector<16x32xf32>, vector<32x32xf32> -> vector<32x32xf32>
    %216 = vector.broadcast %177 : vector<1x32xf32> to vector<32x32xf32>
    %217 = arith.addf %216, %215 : vector<32x32xf32>
    %218 = vector.extract_strided_slice %211 {offsets = [4, 0, 0], sizes = [4, 8, 16], strides = [1, 1, 1]} : vector<8x8x16xf32> to vector<4x8x16xf32>
    %219 = vector.shape_cast %218 : vector<4x8x16xf32> to vector<32x16xf32>
    %220 = vector.extract_strided_slice %169 {offsets = [16, 0], sizes = [16, 32], strides = [1, 1]} : vector<32x32xf32> to vector<16x32xf32>
    %cst_74 = arith.constant dense<0.000000e+00> : vector<32x32xf32>
    %221 = tpu.matmul %219, %220, %cst_74 {dimension_numbers = #tpu.dot_dimension_numbers<[1], [0], [0], [1], [0, 0, 1, 1], [], []>} : vector<32x16xf32>, vector<16x32xf32>, vector<32x32xf32> -> vector<32x32xf32>
    %222 = arith.addf %217, %221 : vector<32x32xf32>
    %223 = arith.addf %165, %222 : vector<32x32xf32>
    %cst_75 = arith.constant dense<0.000000e+00> : vector<32xf32>
    %224 = vector.multi_reduction <add>, %223, %cst_75 [1] : vector<32x32xf32> to vector<32xf32>
    %225 = vector.shape_cast %224 : vector<32xf32> to vector<32x1xf32>
    %cst_76 = arith.constant 3.200000e+01 : f32
    %226 = vector.broadcast %cst_76 : f32 to vector<32x1xf32>
    %227 = arith.divf %225, %226 : vector<32x1xf32>
    %228 = vector.broadcast %227 : vector<32x1xf32> to vector<32x32xf32>
    %229 = arith.subf %223, %228 : vector<32x32xf32>
    %230 = arith.mulf %229, %229 : vector<32x32xf32>
    %cst_77 = arith.constant dense<0.000000e+00> : vector<32xf32>
    %231 = vector.multi_reduction <add>, %230, %cst_77 [1] : vector<32x32xf32> to vector<32xf32>
    %232 = vector.shape_cast %231 : vector<32xf32> to vector<32x1xf32>
    %cst_78 = arith.constant 3.200000e+01 : f32
    %233 = vector.broadcast %cst_78 : f32 to vector<32x1xf32>
    %234 = arith.divf %232, %233 : vector<32x1xf32>
    %235 = vector.broadcast %227 : vector<32x1xf32> to vector<32x32xf32>
    %236 = arith.subf %223, %235 : vector<32x32xf32>
    %cst_79 = arith.constant 9.99999996E-13 : f32
    %237 = vector.broadcast %cst_79 : f32 to vector<32x1xf32>
    %238 = arith.addf %234, %237 : vector<32x1xf32>
    %239 = math.rsqrt %238 : vector<32x1xf32>
    %240 = vector.broadcast %239 : vector<32x1xf32> to vector<32x32xf32>
    %241 = arith.mulf %236, %240 : vector<32x32xf32>
    %242 = vector.broadcast %180 : vector<1x32xf32> to vector<32x32xf32>
    %243 = arith.mulf %241, %242 : vector<32x32xf32>
    %244 = vector.broadcast %181 : vector<1x32xf32> to vector<32x32xf32>
    %245 = arith.addf %243, %244 : vector<32x32xf32>
    %cst_80 = arith.constant dense<0.000000e+00> : vector<32x64xf32>
    %246 = tpu.matmul %245, %171, %cst_80 {dimension_numbers = #tpu.dot_dimension_numbers<[1], [0], [0], [1], [0, 0, 1, 1], [], []>} : vector<32x32xf32>, vector<32x64xf32>, vector<32x64xf32> -> vector<32x64xf32>
    %247 = vector.broadcast %178 : vector<1x64xf32> to vector<32x64xf32>
    %248 = arith.addf %246, %247 : vector<32x64xf32>
    %cst_81 = arith.constant 5.000000e-01 : f32
    %249 = vector.broadcast %cst_81 : f32 to vector<32x64xf32>
    %250 = arith.mulf %249, %248 : vector<32x64xf32>
    %cst_82 = arith.constant 4.471500e-02 : f32
    %251 = vector.broadcast %cst_82 : f32 to vector<32x64xf32>
    %252 = arith.mulf %251, %248 : vector<32x64xf32>
    %253 = arith.mulf %252, %248 : vector<32x64xf32>
    %254 = arith.mulf %253, %248 : vector<32x64xf32>
    %255 = arith.addf %248, %254 : vector<32x64xf32>
    %cst_83 = arith.constant 0.797884583 : f32
    %256 = vector.broadcast %cst_83 : f32 to vector<32x64xf32>
    %257 = arith.mulf %256, %255 : vector<32x64xf32>
    %258 = math.tanh %257 : vector<32x64xf32>
    %cst_84 = arith.constant 1.000000e+00 : f32
    %259 = vector.broadcast %cst_84 : f32 to vector<32x64xf32>
    %260 = arith.addf %259, %258 : vector<32x64xf32>
    %261 = arith.mulf %250, %260 : vector<32x64xf32>
    %cst_85 = arith.constant dense<0.000000e+00> : vector<32x32xf32>
    %262 = tpu.matmul %261, %173, %cst_85 {dimension_numbers = #tpu.dot_dimension_numbers<[1], [0], [0], [1], [0, 0, 1, 1], [], []>} : vector<32x64xf32>, vector<64x32xf32>, vector<32x32xf32> -> vector<32x32xf32>
    %263 = vector.broadcast %179 : vector<1x32xf32> to vector<32x32xf32>
    %264 = arith.addf %262, %263 : vector<32x32xf32>
    %265 = arith.addf %245, %264 : vector<32x32xf32>
    %cst_86 = arith.constant dense<0.000000e+00> : vector<32xf32>
    %266 = vector.multi_reduction <add>, %265, %cst_86 [1] : vector<32x32xf32> to vector<32xf32>
    %267 = vector.shape_cast %266 : vector<32xf32> to vector<32x1xf32>
    %cst_87 = arith.constant 3.200000e+01 : f32
    %268 = vector.broadcast %cst_87 : f32 to vector<32x1xf32>
    %269 = arith.divf %267, %268 : vector<32x1xf32>
    %270 = vector.broadcast %269 : vector<32x1xf32> to vector<32x32xf32>
    %271 = arith.subf %265, %270 : vector<32x32xf32>
    %272 = arith.mulf %271, %271 : vector<32x32xf32>
    %cst_88 = arith.constant dense<0.000000e+00> : vector<32xf32>
    %273 = vector.multi_reduction <add>, %272, %cst_88 [1] : vector<32x32xf32> to vector<32xf32>
    %274 = vector.shape_cast %273 : vector<32xf32> to vector<32x1xf32>
    %cst_89 = arith.constant 3.200000e+01 : f32
    %275 = vector.broadcast %cst_89 : f32 to vector<32x1xf32>
    %276 = arith.divf %274, %275 : vector<32x1xf32>
    %277 = vector.broadcast %269 : vector<32x1xf32> to vector<32x32xf32>
    %278 = arith.subf %265, %277 : vector<32x32xf32>
    %cst_90 = arith.constant 9.99999996E-13 : f32
    %279 = vector.broadcast %cst_90 : f32 to vector<32x1xf32>
    %280 = arith.addf %276, %279 : vector<32x1xf32>
    %281 = math.rsqrt %280 : vector<32x1xf32>
    %282 = vector.broadcast %281 : vector<32x1xf32> to vector<32x32xf32>
    %283 = arith.mulf %278, %282 : vector<32x32xf32>
    %284 = vector.broadcast %182 : vector<1x32xf32> to vector<32x32xf32>
    %285 = arith.mulf %283, %284 : vector<32x32xf32>
    %286 = vector.broadcast %183 : vector<1x32xf32> to vector<32x32xf32>
    %287 = arith.addf %285, %286 : vector<32x32xf32>
    %288 = vector.shape_cast %287 : vector<32x32xf32> to vector<4x8x32xf32>
    %289 = vector.extract_strided_slice %288 {offsets = [0, 0, 0], sizes = [4, 1, 32], strides = [1, 1, 1]} : vector<4x8x32xf32> to vector<4x1x32xf32>
    %290 = vector.shape_cast %289 : vector<4x1x32xf32> to vector<4x32xf32>
    %291 = vector.shape_cast %290 : vector<4x32xf32> to vector<2x2x32xf32>
    %292 = vector.extract_strided_slice %291 {offsets = [0, 0, 0], sizes = [2, 1, 32], strides = [1, 1, 1]} : vector<2x2x32xf32> to vector<2x1x32xf32>
    %293 = vector.shape_cast %292 : vector<2x1x32xf32> to vector<2x32xf32>
    %294 = vector.extract_strided_slice %291 {offsets = [0, 1, 0], sizes = [2, 1, 32], strides = [1, 1, 1]} : vector<2x2x32xf32> to vector<2x1x32xf32>
    %295 = vector.shape_cast %294 : vector<2x1x32xf32> to vector<2x32xf32>
    %c0_91 = arith.constant 0 : index
    %c0_92 = arith.constant 0 : index
    %296 = vector.load %arg11[%c0_91, %c0_92] : memref<5x128xf32, #tpu.memory_space<vmem>>, vector<5x128xf32>
    %297 = arith.mulf %293, %295 : vector<2x32xf32>
    %c0_93 = arith.constant 0 : index
    %c0_94 = arith.constant 0 : index
    %298 = vector.load %arg10[%c0_93, %c0_94] : memref<32x128xf32, #tpu.memory_space<vmem>>, vector<32x128xf32>
    %cst_95 = arith.constant dense<0.000000e+00> : vector<2x128xf32>
    %299 = tpu.matmul %297, %298, %cst_95 {dimension_numbers = #tpu.dot_dimension_numbers<[1], [0], [0], [1], [0, 0, 1, 1], [], []>} : vector<2x32xf32>, vector<32x128xf32>, vector<2x128xf32> -> vector<2x128xf32>
    %300 = vector.extract_strided_slice %296 {offsets = [0, 0], sizes = [1, 128], strides = [1, 1]} : vector<5x128xf32> to vector<1x128xf32>
    %301 = vector.broadcast %300 : vector<1x128xf32> to vector<2x128xf32>
    %302 = arith.addf %299, %301 : vector<2x128xf32>
    %cst_96 = arith.constant 0.000000e+00 : f32
    %303 = vector.broadcast %cst_96 : f32 to vector<2x128xf32>
    %304 = arith.maximumf %302, %303 : vector<2x128xf32>
    %305 = vector.extract_strided_slice %296 {offsets = [1, 0], sizes = [1, 128], strides = [1, 1]} : vector<5x128xf32> to vector<1x128xf32>
    %306 = vector.extract_strided_slice %296 {offsets = [2, 0], sizes = [1, 128], strides = [1, 1]} : vector<5x128xf32> to vector<1x128xf32>
    %cst_97 = arith.constant dense<0.000000e+00> : vector<2xf32>
    %307 = vector.multi_reduction <add>, %304, %cst_97 [1] : vector<2x128xf32> to vector<2xf32>
    %308 = vector.shape_cast %307 : vector<2xf32> to vector<2x1xf32>
    %cst_98 = arith.constant 1.280000e+02 : f32
    %309 = vector.broadcast %cst_98 : f32 to vector<2x1xf32>
    %310 = arith.divf %308, %309 : vector<2x1xf32>
    %311 = vector.broadcast %310 : vector<2x1xf32> to vector<2x128xf32>
    %312 = arith.subf %304, %311 : vector<2x128xf32>
    %313 = arith.mulf %312, %312 : vector<2x128xf32>
    %cst_99 = arith.constant dense<0.000000e+00> : vector<2xf32>
    %314 = vector.multi_reduction <add>, %313, %cst_99 [1] : vector<2x128xf32> to vector<2xf32>
    %315 = vector.shape_cast %314 : vector<2xf32> to vector<2x1xf32>
    %cst_100 = arith.constant 1.280000e+02 : f32
    %316 = vector.broadcast %cst_100 : f32 to vector<2x1xf32>
    %317 = arith.divf %315, %316 : vector<2x1xf32>
    %318 = vector.broadcast %310 : vector<2x1xf32> to vector<2x128xf32>
    %319 = arith.subf %304, %318 : vector<2x128xf32>
    %cst_101 = arith.constant 9.99999974E-6 : f32
    %320 = vector.broadcast %cst_101 : f32 to vector<2x1xf32>
    %321 = arith.addf %317, %320 : vector<2x1xf32>
    %322 = math.rsqrt %321 : vector<2x1xf32>
    %323 = vector.broadcast %322 : vector<2x1xf32> to vector<2x128xf32>
    %324 = arith.mulf %319, %323 : vector<2x128xf32>
    %325 = vector.broadcast %305 : vector<1x128xf32> to vector<2x128xf32>
    %326 = arith.mulf %324, %325 : vector<2x128xf32>
    %327 = vector.broadcast %306 : vector<1x128xf32> to vector<2x128xf32>
    %328 = arith.addf %326, %327 : vector<2x128xf32>
    %329 = vector.extract_strided_slice %296 {offsets = [3, 0], sizes = [1, 128], strides = [1, 1]} : vector<5x128xf32> to vector<1x128xf32>
    %330 = vector.broadcast %329 : vector<1x128xf32> to vector<2x128xf32>
    %331 = arith.mulf %328, %330 : vector<2x128xf32>
    %cst_102 = arith.constant dense<0.000000e+00> : vector<2xf32>
    %332 = vector.multi_reduction <add>, %331, %cst_102 [1] : vector<2x128xf32> to vector<2xf32>
    %333 = vector.shape_cast %332 : vector<2xf32> to vector<2x1xf32>
    %334 = vector.extract_strided_slice %296 {offsets = [4, 0], sizes = [1, 1], strides = [1, 1]} : vector<5x128xf32> to vector<1x1xf32>
    %335 = vector.broadcast %334 : vector<1x1xf32> to vector<2x1xf32>
    %336 = arith.addf %333, %335 : vector<2x1xf32>
    %337 = arith.negf %336 : vector<2x1xf32>
    %338 = math.exp %337 : vector<2x1xf32>
    %cst_103 = arith.constant 1.000000e+00 : f32
    %339 = vector.broadcast %cst_103 : f32 to vector<2x1xf32>
    %340 = arith.addf %339, %338 : vector<2x1xf32>
    %341 = arith.divf %339, %340 : vector<2x1xf32>
    %342 = vector.shape_cast %341 : vector<2x1xf32> to vector<1x2x1xf32>
    %c0_104 = arith.constant 0 : index
    %c0_105 = arith.constant 0 : index
    %c0_106 = arith.constant 0 : index
    %343 = vector.load %arg12[%c0_104, %c0_105, %c0_106] : memref<1x2x1xf32, #tpu.memory_space<vmem>>, vector<1x2x1xf32>
    tpu.vector_store %arg12[%c0_104, %c0_105, %c0_106], %342 {strides = array<i32>} : memref<1x2x1xf32, #tpu.memory_space<vmem>>, vector<1x2x1xf32>,
    return
  }
  func.func @transform_0(%arg0: i32) -> (i32, i32, i32) {
    %c0_i32 = arith.constant 0 : i32
    %c0_i32_0 = arith.constant 0 : i32
    %c0_i32_1 = arith.constant 0 : i32
    return %arg0, %c0_i32, %c0_i32_0 : i32, i32, i32
  }
  func.func @transform_1(%arg0: i32) -> (i32, i32, i32) {
    %c0_i32 = arith.constant 0 : i32
    %c0_i32_0 = arith.constant 0 : i32
    %c0_i32_1 = arith.constant 0 : i32
    return %arg0, %c0_i32, %c0_i32_0 : i32, i32, i32
  }
  func.func @transform_2(%arg0: i32) -> (i32, i32) {
    %c0_i32 = arith.constant 0 : i32
    %c0_i32_0 = arith.constant 0 : i32
    %c0_i32_1 = arith.constant 0 : i32
    return %c0_i32, %c0_i32_0 : i32, i32
  }
  func.func @transform_3(%arg0: i32) -> (i32, i32) {
    %c0_i32 = arith.constant 0 : i32
    %c0_i32_0 = arith.constant 0 : i32
    %c0_i32_1 = arith.constant 0 : i32
    return %c0_i32, %c0_i32_0 : i32, i32
  }
  func.func @transform_4(%arg0: i32) -> (i32, i32, i32) {
    %c0_i32 = arith.constant 0 : i32
    %c0_i32_0 = arith.constant 0 : i32
    %c0_i32_1 = arith.constant 0 : i32
    %c0_i32_2 = arith.constant 0 : i32
    return %c0_i32, %c0_i32_0, %c0_i32_1 : i32, i32, i32
  }
  func.func @transform_5(%arg0: i32) -> (i32, i32, i32) {
    %c0_i32 = arith.constant 0 : i32
    %c0_i32_0 = arith.constant 0 : i32
    %c0_i32_1 = arith.constant 0 : i32
    %c0_i32_2 = arith.constant 0 : i32
    return %c0_i32, %c0_i32_0, %c0_i32_1 : i32, i32, i32
  }
  func.func @transform_6(%arg0: i32) -> (i32, i32, i32) {
    %c0_i32 = arith.constant 0 : i32
    %c0_i32_0 = arith.constant 0 : i32
    %c0_i32_1 = arith.constant 0 : i32
    %c0_i32_2 = arith.constant 0 : i32
    return %c0_i32, %c0_i32_0, %c0_i32_1 : i32, i32, i32
  }
  func.func @transform_7(%arg0: i32) -> (i32, i32, i32) {
    %c0_i32 = arith.constant 0 : i32
    %c0_i32_0 = arith.constant 0 : i32
    %c0_i32_1 = arith.constant 0 : i32
    %c0_i32_2 = arith.constant 0 : i32
    return %c0_i32, %c0_i32_0, %c0_i32_1 : i32, i32, i32
  }
  func.func @transform_8(%arg0: i32) -> (i32, i32, i32) {
    %c0_i32 = arith.constant 0 : i32
    %c0_i32_0 = arith.constant 0 : i32
    %c0_i32_1 = arith.constant 0 : i32
    %c0_i32_2 = arith.constant 0 : i32
    return %c0_i32, %c0_i32_0, %c0_i32_1 : i32, i32, i32
  }
  func.func @transform_9(%arg0: i32) -> (i32, i32) {
    %c0_i32 = arith.constant 0 : i32
    %c0_i32_0 = arith.constant 0 : i32
    %c0_i32_1 = arith.constant 0 : i32
    return %c0_i32, %c0_i32_0 : i32, i32
  }
  func.func @transform_10(%arg0: i32) -> (i32, i32) {
    %c0_i32 = arith.constant 0 : i32
    %c0_i32_0 = arith.constant 0 : i32
    %c0_i32_1 = arith.constant 0 : i32
    return %c0_i32, %c0_i32_0 : i32, i32
  }
  func.func @transform_11(%arg0: i32) -> (i32, i32, i32) {
    %c0_i32 = arith.constant 0 : i32
    %c0_i32_0 = arith.constant 0 : i32
    %c0_i32_1 = arith.constant 0 : i32
    return %arg0, %c0_i32, %c0_i32_0 : i32, i32, i32
  }
}

</mosaic_0001>

<bundles_post_ra>
// kernel: tpu_custom_call.1
= control target key start
LH: loop header
LB: loop body
LE: loop exit
PB: predicated region body
PF: predicated region fallthrough
CT: control target
= control target key end

     0   :  { %v5513_v0 = vmov 0   ;;  %v5514_v9 = vmov 1   ;;  %v42_v30 = vlaneseq  ;;  %v5515_v36 = vmov 1.0   ;;  %s5519_s28 = smov 96   ;;  %s6418_s0 = inlined_call_operand.vmem [shape: s32[2,16,2], index: 0, kind: input, shape index: {}]   ;;  %s6419_s2 = inlined_call_operand.vmem [shape: f32[128,32], index: 2, kind: input, shape index: {}]   ;;  %s6420_s4 = inlined_call_operand.vmem [shape: f32[2,32,96], index: 4, kind: input, shape index: {}]   ;;  %s6421_s3 = inlined_call_operand.vmem [shape: f32[2,32], index: 3, kind: input, shape index: {}]   ;;  %s6422_s8 = inlined_call_operand.vmem [shape: f32[2,8,128], index: 8, kind: input, shape index: {}]   ;;  %s6423_s1 = inlined_call_operand.vmem [shape: f32[2,2,8], index: 1, kind: input, shape index: {}]   ;;  %s6424_s5 = inlined_call_operand.vmem [shape: f32[2,32,32], index: 5, kind: input, shape index: {}]   ;;  %s6425_s6 = inlined_call_operand.vmem [shape: f32[2,32,64], index: 6, kind: input, shape index: {}]   ;;  %s6426_s7 = inlined_call_operand.vmem [shape: f32[2,64,32], index: 7, kind: input, shape index: {}]   ;;  %s6427_s9 = inlined_call_operand.vmem [shape: f32[32,128], index: 9, kind: input, shape index: {}]   ;;  %s6428_s10 = inlined_call_operand.vmem [shape: f32[5,128], index: 10, kind: input, shape index: {}]   ;;  %s6429_s11 = inlined_call_operand.vmem [shape: f32[1,2,1], index: 11, kind: output, shape index: {}]  }
   0x1   :  { %5382 = vset.pattern.permute.xlu1 %v5513_v0  ;;  %5380 = vset.pattern.permute.xlu0 %v5513_v0  ;;  %v39_v1 = vld [vmem:[%s6418_s0 + $0x8] sm:$0xff]  ;;  %v38_v2 = vld [vmem:[%s6418_s0] sm:$0xff]  ;;  %v90_v6 = vld [vmem:[%s6419_s2 + $0x10] sm:$0xff]  ;;  %vm190_vm12 = vcmask 261120   ;;  %vm5518_vm13 = vmmov 0   ;;  %vm463_vm14 = vcmask 130048  }
   0x2   :  { %48 = vperm.xlu1 %5382, %v39_v1   ;;  %45 = vperm.xlu0 %5380, %v38_v2   ;;  %v88_v3 = vld [vmem:[%s6419_s2] sm:$0xff]  ;;  %v89_v4 = vld [vmem:[%s6419_s2 + $0x8] sm:$0xff]  ;;  %v91_v7 = vld [vmem:[%s6419_s2 + $0x18] sm:$0xff]  ;;  %v43_v33 = vand.u32 127, %v42_v30  ;;  %vm275_vm15 = vcmask 1043456  }
   0x3   :  { %v5235_v5 = vpack.c.bf16 %v89_v4, %v88_v3  ;;  %v5239_v8 = vpack.c.bf16 %v91_v7, %v90_v6  ;;  %v92_v10 = vld [vmem:[%s6419_s2 + $0x20] sm:$0xff]  ;;  %v93_v11 = vld [vmem:[%s6419_s2 + $0x28] sm:$0xff]  ;;  %v40_v12 = vld [vmem:[%s6418_s0 + $0x10] sm:$0xff] }
   0x4   :  { %v5243_v13 = vpack.c.bf16 %v93_v11, %v92_v10  ;;  %v94_v14 = vld [vmem:[%s6419_s2 + $0x30] sm:$0xff]  ;;  %v95_v15 = vld [vmem:[%s6419_s2 + $0x38] sm:$0xff]  ;;  %v96_v18 = vld [vmem:[%s6419_s2 + $0x40] sm:$0xff] }
   0x5   :  { %5236 = vmatprep.subr.bf16.mxu0 %v5235_v5  ;;  %v41_v16 = vld [vmem:[%s6418_s0 + $0x18] sm:$0xff]  ;;  %v5247_v17 = vpack.c.bf16 %v95_v15, %v94_v14  ;;  %v97_v19 = vld [vmem:[%s6419_s2 + $0x48] sm:$0xff]  ;;  %v98_v21 = vld [vmem:[%s6419_s2 + $0x50] sm:$0xff]  ;;  %s5517_s0 = smov 112  }
   0x6   :  { %5383 = vset.pattern.permute.xlu1 %v5514_v9  ;;  %5381 = vset.pattern.permute.xlu0 %v5514_v9  ;;  %v5251_v20 = vpack.c.bf16 %v97_v19, %v96_v18  ;;  %v99_v22 = vld [vmem:[%s6419_s2 + $0x58] sm:$0xff]  ;;  %v100_v24 = vld [vmem:[%s6419_s2 + $0x60] sm:$0xff]  ;;  %v101_v25 = vld [vmem:[%s6419_s2 + $0x68] sm:$0xff] }
   0x7   :  { %64 = vperm.xlu1 %5383, %v39_v1   ;;  %61 = vperm.xlu0 %5381, %v38_v2   ;;  %v5255_v23 = vpack.c.bf16 %v99_v22, %v98_v21  ;;  %v5259_v26 = vpack.c.bf16 %v101_v25, %v100_v24  ;;  %v102_v27 = vld [vmem:[%s6419_s2 + $0x70] sm:$0xff]  ;;  %v103_v28 = vld [vmem:[%s6419_s2 + $0x78] sm:$0xff]  ;;  %v328_v6 = vld [vmem:[%s6420_s4 + $0x8] sm:$0xff] }
   0x8   :  { %5238 = vmatpush3.bf16.msra.mxu0 %v5235_v5  ;;  %v5263_v29 = vpack.c.bf16 %v103_v28, %v102_v27  ;;  %v327_v5 = vld [vmem:[%s6420_s4] sm:$0xff]  ;;  %v329_v7 = vld [vmem:[%s6420_s4 + $0x10] sm:$0xff]  ;;  %v330_v9 = vld [vmem:[%s6420_s4 + $0x18] sm:$0xff] }
   0x9   :  { %5240 = vmatprep.subr.bf16.mxu0 %v5239_v8  ;;  %v5271_v10 = vpack.c.bf16 %v330_v9, %v329_v7  ;;  %v189_v25 = vld [vmem:[%s6421_s3] sm:$0x3] }
   0xa   :  { %v260_v7 = vld [vmem:[%s6423_s1] sm:$0x3] }
   0xb   :  { %5384 = vset.pattern.permute.xlu1 %v5513_v0  ;;  %67 = vperm.xlu0 %5381, %v40_v12  }
   0xc   :  { %51 = vperm.xlu1 %5384, %v40_v12   ;;  %5242 = vmatpush3.bf16.msra.mxu0 %v5239_v8  ;;  %v5267_v8 = vpack.c.bf16 %v328_v6, %v327_v5 }
   0xd   :  { %5244 = vmatprep.subr.bf16.mxu0 %v5243_v13 }
   0xe   :  { %5268 = vmatprep.subr.bf16.mxu1 %v5267_v8 }
   0xf   :  { %70 = vperm.xlu0 %5381, %v41_v16   ;;  %5270 = vmatpush3.bf16.msra.mxu1 %v5267_v8  ;;  %v261_v8 = vld [vmem:[%s6423_s1 + $0x2] sm:$0x3]  ;;  %s5522_s1 = smov 64  }
  0x10   :  { %54 = vperm.xlu1 %5384, %v41_v16   ;;  %5246 = vmatpush3.bf16.msra.mxu0 %v5243_v13  ;;  %v264_v9 = vcombine.low %v260_v7, %v261_v8 }
  0x11   :  { %5248 = vmatprep.subr.bf16.mxu0 %v5247_v17  ;;  %5272 = vmatprep.subr.bf16.mxu1 %v5271_v10 }
  0x13   :  { %5274 = vmatpush3.bf16.msra.mxu1 %v5271_v10 }
  0x14   :  { %5250 = vmatpush3.bf16.msra.mxu0 %v5247_v17  ;;  %v5666_v17 = vshrl.u32 %v42_v30, 7 }
  0x15   :  { %5252 = vmatprep.subr.bf16.mxu0 %v5251_v20 }
  0x18   :  { %5254 = vmatpush3.bf16.msra.mxu0 %v5251_v20 }
  0x19   :  { %5256 = vmatprep.subr.bf16.mxu0 %v5255_v23 }
  0x1c   :  { %5258 = vmatpush3.bf16.msra.mxu0 %v5255_v23  ;;  %v5669_v23 = vsub.s32 0, %v5666_v17 }
  0x1d   :  { %5260 = vmatprep.subr.bf16.mxu0 %v5259_v26 }
  0x1e   :  { %v247_v27 = vrot.slane %v189_v25, %v5669_v23 }
  0x20   :  { %5262 = vmatpush3.bf16.msra.mxu0 %v5259_v26  ;;  %v5675_v26 = vsub.s32 1, %v5666_v17 }
  0x21   :  { %5264 = vmatprep.subr.bf16.mxu0 %v5263_v29 }
  0x24   :  { %5266 = vmatpush3.bf16.msra.mxu0 %v5263_v29 }
  0x81   :  { %v49_v31 = vpop.permute.xlu1 %48  ;;  %v46_v32 = vpop.permute.xlu0 %45 }
  0x82   :  { %vm57_vm0 = vcmp.eq.s32.totalorder %v43_v33, %v49_v31  ;;  %vm56_vm4 = vcmp.eq.s32.totalorder %v43_v33, %v46_v32  ;;  %v255_v32 = vrot.slane %v189_v25, %v5675_v26 }
  0x86   :  { %v65_v34 = vpop.permute.xlu1 %64  ;;  %v62_v35 = vpop.permute.xlu0 %61 }
  0x87   :  { %vm73_vm1 = vcmp.eq.s32.totalorder %v43_v33, %v65_v34  ;;  %vm72_vm2 = vcmp.eq.s32.totalorder %v43_v33, %v62_v35 }
  0x88   :  { %vm77_vm3 = vmor %vm57_vm0, %vm73_vm1  ;;  %vm1126_vm0 = vcmask 64512   ;;  %vm2242_vm1 = vcmask 523264  }
  0x89   :  { %vm76_vm5 = vmor %vm56_vm4, %vm72_vm2  ;;  %vm4473_vm2 = vcmask 1041409   ;;  %vm4592_vm4 = vcmask 1024  }
  0x8a   :  { %4918 = vmatprep.mubr.msk.f32.mxu0 %vm76_vm5, %v5515_v36  ;;  %v68_v37 = vpop.permute.xlu0 %67 }
  0x8b   :  { %4919 = vmatmul.mubr.msk.f32.vlgmr.msra.gmra.mrb[0].mxu0 %vm77_vm3, %v5515_v36  ;;  %vm74_vm6 = vcmp.eq.s32.totalorder %v43_v33, %v68_v37  ;;  %v52_v38 = vpop.permute.xlu1 %51  ;;  %vm4548_vm3 = vcmask 1041408  }
  0x8c   :  { %vm58_vm7 = vcmp.eq.s32.totalorder %v43_v33, %v52_v38 }
  0x8d   :  { %vm78_vm8 = vmor %vm58_vm7, %vm74_vm6 }
  0x8e   :  { %4921 = vmatprep.mubr.msk.f32.mxu0 %vm78_vm8, %v5515_v36  ;;  %v71_v39 = vpop.permute.xlu0 %70 }
  0x8f   :  { %vm75_vm9 = vcmp.eq.s32.totalorder %v43_v33, %v71_v39  ;;  %v55_v40 = vpop.permute.xlu1 %54 }
  0x90   :  { %vm59_vm10 = vcmp.eq.s32.totalorder %v43_v33, %v55_v40 }
  0x91   :  { %vm79_vm11 = vmor %vm59_vm10, %vm75_vm9 }
  0x92   :  { %4922 = vmatmul.mubr.msk.f32.gmra.mrb[2].mxu0 %vm79_vm11, %v5515_v36 }
 0x15e   :  { %v4920_v41 = vpop.f32.mrb[0].mxu0 }
 0x15f   :  { %v170_v42 = vpop.f32.mrb[1].mxu0  ;;  %v194_v43 = vsel %vm190_vm12, %v4920_v41, 0.0 }
 0x160   :  { %195 = vadd.xlane.f32.xlu0 %v194_v43  ;;  %v191_v44 = vsel %vm190_vm12, %v170_v42, 0.0 }
 0x161   :  { %192 = vadd.xlane.f32.xlu1 %v191_v44 }
 0x165   :  { %v4923_v45 = vpop.f32.mrb[2].mxu0 }
 0x166   :  { %v180_v46 = vpop.f32.mrb[3].mxu0  ;;  %v200_v47 = vsel %vm190_vm12, %v4923_v45, 0.0 }
 0x167   :  { %201 = vadd.xlane.f32.xlu1 %v200_v47  ;;  %v197_v48 = vsel %vm190_vm12, %v180_v46, 0.0 }
 0x168   :  { %198 = vadd.xlane.f32.xlu0 %v197_v48 }
 0x1ed   :  { %v196_v49 = vpop.xlane.xlu0 %195 }
 0x1ee   :  { %v205_v50 = vmul.f32 0.03125, %v196_v49  ;;  %v193_v51 = vpop.xlane.xlu1 %192 }
 0x1ef   :  { %v204_v52 = vmul.f32 0.03125, %v193_v51 }
 0x1f0   :  { %v209_v53 = vsub.f32 %v4920_v41, %v205_v50  ;;  %v5516_v50 = vmov 0.0  }
 0x1f1   :  { %v208_v54 = vsub.f32 %v170_v42, %v204_v52  ;;  %4938 = vmatprep.subr.mxu1 %v5516_v50  ;;  %4968 = vmatprep.subr.mxu0 %v5516_v50 }
 0x1f2   :  { %v213_v55 = vmul.f32 %v209_v53, %v209_v53  ;;  %4970 = vmatprep.mubr.msk.f32.mxu0 %vm5518_vm13, %v5516_v50 }
 0x1f3   :  { %v212_v56 = vmul.f32 %v208_v54, %v208_v54 }
 0x1f4   :  { %v202_v57 = vpop.xlane.xlu1 %201  ;;  %v219_v58 = vsel %vm190_vm12, %v213_v55, 0.0 }
 0x1f5   :  { %v207_v59 = vmul.f32 0.03125, %v202_v57  ;;  %220 = vadd.xlane.f32.xlu1 %v219_v58  ;;  %v216_v60 = vsel %vm190_vm12, %v212_v56, 0.0  ;;  %v199_v61 = vpop.xlane.xlu0 %198 }
 0x1f6   :  { %217 = vadd.xlane.f32.xlu0 %v216_v60  ;;  %v206_v62 = vmul.f32 0.03125, %v199_v61 }
 0x1f7   :  { %v211_v63 = vsub.f32 %v4923_v45, %v207_v59  ;;  %v5698_v45 = vld [vmem:[%s6422_s8] sm:$0xff] }
 0x1f8   :  { %v210_v0 = vsub.f32 %v180_v46, %v206_v62  ;;  %v351_v46 = vrot.slane %v5698_v45, %v5669_v23 }
 0x1f9   :  { %v215_v1 = vmul.f32 %v211_v63, %v211_v63 }
 0x1fa   :  { %v214_v2 = vmul.f32 %v210_v0, %v210_v0 }
 0x1fb   :  { %v225_v3 = vsel %vm190_vm12, %v215_v1, 0.0 }
 0x1fc   :  { %226 = vadd.xlane.f32.xlu1 %v225_v3  ;;  %v222_v4 = vsel %vm190_vm12, %v214_v2, 0.0 }
 0x1fd   :  { %223 = vadd.xlane.f32.xlu0 %v222_v4  ;;  %v5520_v4 = vmov 1983009808  }
 0x1fe   :  { %v266_v5 = vunpack.c.l.s4 %v5520_v4 }
 0x200   :  { %v267_v6 = vunpack.c.0.s8 %v266_v5 }
 0x202   :  { %v270_v10 = vsub.s32 %v267_v6, %v5666_v17 }
 0x282   :  { %v221_v11 = vpop.xlane.xlu1 %220 }
 0x283   :  { %v229_v12 = vmul.f32 0.03125, %v221_v11  ;;  %v218_v13 = vpop.xlane.xlu0 %217  ;;  %v5521_v11 = vmov 1966171168  }
 0x284   :  { %v228_v14 = vmul.f32 0.03125, %v218_v13  ;;  %v271_v13 = vrot.slane %v264_v9, %v270_v10 }
 0x285   :  { %v233_v15 = vadd.f32 1e-12, %v229_v12  ;;  %v280_v12 = vunpack.c.l.s4 %v5521_v11 }
 0x286   :  { %v232_v16 = vadd.f32 1e-12, %v228_v14 }
 0x287   :  { %5385 = vrsqrt.f32 %v233_v15  ;;  %v281_v14 = vunpack.c.0.s8 %v280_v12  ;;  %v273_v15 = vcombine.low %v271_v13, %v271_v13 }
 0x288   :  { %5387 = vrsqrt.f32 %v232_v16 }
 0x289   :  { %v227_v18 = vpop.xlane.xlu1 %226  ;;  %v284_v16 = vsub.s32 %v281_v14, %v5666_v17 }
 0x28a   :  { %v231_v19 = vmul.f32 0.03125, %v227_v18  ;;  %v224_v20 = vpop.xlane.xlu0 %223  ;;  %v276_v18 = vsel %vm275_vm15, %v271_v13, %v273_v15 }
 0x28b   :  { %v230_v21 = vmul.f32 0.03125, %v224_v20 }
 0x28c   :  { %v235_v22 = vadd.f32 1e-12, %v231_v19  ;;  %v285_v19 = vrot.slane %v276_v18, %v284_v16 }
 0x28d   :  { %v234_v24 = vadd.f32 1e-12, %v230_v21 }
 0x28e   :  { %5389 = vrsqrt.f32 %v235_v22  ;;  %v301_v20 = vrot.slane %v285_v19, %v284_v16  ;;  %v293_v21 = vcombine.high %v285_v19, %v285_v19 }
 0x28f   :  { %5391 = vrsqrt.f32 %v234_v24 }
 0x290   :  { %v5805_v22 = vrot.slane %v301_v20, %v5669_v23  ;;  %v315_v24 = vrot.slane %v293_v21, %v284_v16 }
 0x291   :  { %v5386_v28 = vpop.eup %5385 }
 0x292   :  { %v5388_v29 = vpop.eup %5387  ;;  %v241_v30 = vmul.f32 %v5386_v28, %v209_v53 }
 0x293   :  { %v240_v31 = vmul.f32 %v5388_v29, %v208_v54 }
 0x294   :  { %v249_v33 = vmul.f32 %v247_v27, %v241_v30  ;;  %v5811_v30 = vrot.slane %v315_v24, %v5669_v23 }
 0x295   :  { %v248_v34 = vmul.f32 %v247_v27, %v240_v31  ;;  %v323_v31 = vcombine.high %v301_v20, %v301_v20 }
 0x296   :  { %v5681_v37 = vadd.f32 %v255_v32, %v249_v33 }
 0x297   :  { %v5679_v35 = vadd.f32 %v255_v32, %v248_v34 }
 0x298   :  { %v5390_v36 = vpop.eup %5389 }
 0x299   :  { %v5392_v38 = vpop.eup %5391  ;;  %4932 = vmatprep.mubr.msk.f32.mxu1 %vm190_vm12, %v5679_v35  ;;  %v243_v39 = vmul.f32 %v5390_v36, %v211_v63 }
 0x29a   :  { %4933 = vmatmul.mubr.msk.f32.vlgmr.msra.gmra.mrb[0].mxu1 %vm190_vm12, %v5681_v37  ;;  %v242_v40 = vmul.f32 %v5392_v38, %v210_v0 }
 0x29b   :  { %v251_v41 = vmul.f32 %v247_v27, %v243_v39  ;;  %v5819_v39 = vrot.slane %v323_v31, %v5669_v23 }
 0x29c   :  { %v250_v42 = vmul.f32 %v247_v27, %v242_v40  ;;  %v325_v40 = vcombine.high %v315_v24, %v315_v24 }
 0x29d   :  { %v5689_v44 = vadd.f32 %v255_v32, %v251_v41 }
 0x29e   :  { %v5687_v43 = vadd.f32 %v255_v32, %v250_v42 }
 0x2a0   :  { %4935 = vmatprep.mubr.msk.f32.mxu1 %vm190_vm12, %v5687_v43 }
 0x2a1   :  { %4936 = vmatmul.mubr.msk.f32.gmra.mrb[2].mxu1 %vm190_vm12, %v5689_v44 }
 0x2a2   :  { %4940 = vmatprep.mubr.msk.f32.mxu1 %vm5518_vm13, %v5516_v50 }
 0x36d   :  { %v4934_v47 = vpop.f32.mrb[0].mxu1 }
 0x36e   :  { %v5702_v48 = vadd.f32 %v4934_v47, %v351_v46  ;;  %v430_v49 = vpop.f32.mrb[1].mxu1 }
 0x36f   :  { %v5706_v51 = vadd.f32 %v430_v49, %v351_v46 }
 0x370   :  { %455 = vrot.lane.b32.xlu1 %v5702_v48, %s5517_s0 }
 0x371   :  { %453 = vrot.lane.b32.xlu0 %v5706_v51, %s5517_s0 }
 0x374   :  { %v4937_v52 = vpop.f32.mrb[2].mxu1 }
 0x375   :  { %v5716_v53 = vadd.f32 %v4937_v52, %v351_v46  ;;  %v440_v54 = vpop.f32.mrb[3].mxu1  ;;  %v5827_v52 = vrot.slane %v325_v40, %v5669_v23 }
 0x376   :  { %v5718_v55 = vadd.f32 %v440_v54, %v351_v46 }
 0x377   :  { %459 = vrot.lane.b32.xlu0 %v5716_v53, %s5517_s0 }
 0x378   :  { %457 = vrot.lane.b32.xlu1 %v5718_v55, %s5517_s0 }
 0x37b   :  { %538 = vrot.lane.b32.xlu0 %v5702_v48, %s5519_s28 }
 0x37c   :  { %461 = vrot.lane.b32.xlu1 %v5706_v51, %s5519_s28 }
 0x37f   :  { %690 = vrot.lane.b32.xlu0 %v5716_v53, %s5519_s28 }
 0x380   :  { %614 = vrot.lane.b32.xlu1 %v5718_v55, %s5519_s28 }
 0x3e2   :  { %v5732_v56 = vpop.permute.xlu1 %455 }
 0x3e3   :  { %842 = vrot.lane.b32.xlu0 %v5732_v56, %s5519_s28  ;;  %v5736_v57 = vpop.permute.xlu0 %453 }
 0x3e4   :  { %766 = vrot.lane.b32.xlu1 %v5736_v57, %s5519_s28 }
 0x3e9   :  { %v5740_v58 = vpop.permute.xlu0 %459 }
 0x3ea   :  { %v5742_v59 = vpop.permute.xlu1 %457  ;;  %994 = vrot.lane.b32.xlu0 %v5740_v58, %s5519_s28 }
 0x3eb   :  { %918 = vrot.lane.b32.xlu1 %v5742_v59, %s5519_s28 }
 0x3ed   :  { %v539_v61 = vpop.permute.xlu0 %538 }
 0x3ee   :  { %v462_v60 = vpop.permute.xlu1 %461 }
 0x3ef   :  { %4939 = vmatpush3.xpose.msk.msra.mxu1 %vm463_vm14, %v462_v60 }
 0x3f0   :  { %4943 = vmatprep.subr.mxu1 %v5516_v50 }
 0x3f1   :  { %v691_v63 = vpop.permute.xlu0 %690 }
 0x3f2   :  { %4941 = vmatmul.mubr.msk.f32.vlgmr.msra.gmra.mrb[4].mxu1 %vm463_vm14, %v5706_v51  ;;  %v615_v62 = vpop.permute.xlu1 %614 }
 0x3f3   :  { %4944 = vmatpush3.xpose.msk.msra.mxu1 %vm463_vm14, %v539_v61  ;;  %4945 = vmatprep.mubr.msk.f32.mxu1 %vm5518_vm13, %v5516_v50 }
 0x3f4   :  { %4948 = vmatprep.subr.mxu1 %v5516_v50 }
 0x3f6   :  { %4946 = vmatmul.mubr.msk.f32.vlgmr.msra.gmra.mrb[6].mxu1 %vm463_vm14, %v5702_v48 }
 0x3f7   :  { %4949 = vmatpush3.xpose.msk.msra.mxu1 %vm463_vm14, %v615_v62  ;;  %4950 = vmatprep.mubr.msk.f32.mxu1 %vm5518_vm13, %v5516_v50 }
 0x3f8   :  { %4953 = vmatprep.subr.mxu1 %v5516_v50 }
 0x3fa   :  { %4951 = vmatmul.mubr.msk.f32.vlgmr.msra.gmra.mrb[8].mxu1 %vm463_vm14, %v5718_v55 }
 0x3fb   :  { %4954 = vmatpush3.xpose.msk.msra.mxu1 %vm463_vm14, %v691_v63  ;;  %4955 = vmatprep.mubr.msk.f32.mxu1 %vm5518_vm13, %v5516_v50 }
 0x3fc   :  { %4958 = vmatprep.subr.mxu1 %v5516_v50 }
 0x3fe   :  { %4956 = vmatmul.mubr.msk.f32.vlgmr.msra.gmra.mrb[10].mxu1 %vm463_vm14, %v5716_v53 }
 0x3ff   :  { %4960 = vmatprep.mubr.msk.f32.mxu1 %vm5518_vm13, %v5516_v50 }
 0x455   :  { %v843_v1 = vpop.permute.xlu0 %842 }
 0x456   :  { %v767_v0 = vpop.permute.xlu1 %766 }
 0x457   :  { %4959 = vmatpush3.xpose.msk.msra.mxu1 %vm463_vm14, %v767_v0 }
 0x458   :  { %4963 = vmatprep.subr.mxu1 %v5516_v50 }
 0x45a   :  { %4961 = vmatmul.mubr.msk.f32.vlgmr.msra.gmra.mrb[12].mxu1 %vm463_vm14, %v5736_v57 }
 0x45b   :  { %4964 = vmatpush3.xpose.msk.msra.mxu1 %vm463_vm14, %v843_v1  ;;  %4965 = vmatprep.mubr.msk.f32.mxu1 %vm5518_vm13, %v5516_v50  ;;  %v278_v1 = vcombine.high %v276_v18, %v276_v18 }
 0x45c   :  { %v995_v2 = vpop.permute.xlu0 %994  ;;  %4973 = vmatprep.subr.mxu1 %v5516_v50 }
 0x45d   :  { %v919_v3 = vpop.permute.xlu1 %918 }
 0x45e   :  { %4966 = vmatmul.mubr.msk.f32.vlgmr.msra.gmra.mrb[14].mxu1 %vm463_vm14, %v5732_v56  ;;  %4969 = vmatpush3.xpose.msk.msra.mxu0 %vm463_vm14, %v919_v3 }
 0x45f   :  { %4974 = vmatpush3.xpose.msk.msra.mxu1 %vm463_vm14, %v995_v2  ;;  %4975 = vmatprep.mubr.msk.f32.mxu1 %vm5518_vm13, %v5516_v50  ;;  %v292_v2 = vrot.slane %v278_v1, %v284_v16 }
 0x460   :  { %4978 = vmatprep.subr.mxu0 %v5516_v50  ;;  %4983 = vmatprep.subr.mxu1 %v5516_v50 }
 0x461   :  { %4971 = vmatmul.mubr.msk.f32.vlgmr.msra.gmra.mrb[4].mxu0 %vm463_vm14, %v5742_v59  ;;  %v308_v3 = vrot.slane %v292_v2, %v284_v16  ;;  %v294_v4 = vcombine.high %v292_v2, %v292_v2 }
 0x462   :  { %4976 = vmatmul.mubr.msk.f32.vlgmr.msra.gmra.mrb[16].mxu1 %vm463_vm14, %v5740_v58  ;;  %4980 = vmatprep.mubr.msk.f32.mxu0 %vm5518_vm13, %v5516_v50 }
 0x463   :  { %4985 = vmatprep.mubr.msk.f32.mxu1 %vm5518_vm13, %v5516_v50  ;;  %v5834_v5 = vrot.slane %v308_v3, %v5669_v23  ;;  %v322_v6 = vrot.slane %v294_v4, %v284_v16  ;;  %v324_v10 = vcombine.high %v308_v3, %v308_v3 }
 0x465   :  { %v5838_v12 = vrot.slane %v322_v6, %v5669_v23  ;;  %v326_v13 = vcombine.high %v322_v6, %v322_v6  ;;  %v5842_v20 = vrot.slane %v324_v10, %v5669_v23 }
 0x467   :  { %v5846_v24 = vrot.slane %v326_v13, %v5669_v23 }
 0x4c5   :  { %v534_v25 = vpop.f32.mrb[4].mxu1 }
 0x4c6   :  { %v1070_v27 = vmul.f32 0.25, %v534_v25  ;;  %v4942_v28 = vpop.f32.mrb[5].mxu1 }
 0x4c8   :  { %v5808_v29 = vadd.f32 %v5805_v22, %v1070_v27 }
 0x4c9   :  { %v610_v32 = vpop.f32.mrb[6].mxu1 }
 0x4ca   :  { %v1071_v33 = vmul.f32 0.25, %v610_v32  ;;  %v4947_v34 = vpop.f32.mrb[7].mxu1  ;;  %v1127_v36 = vsel %vm1126_vm0, %v5808_v29, -inf }
 0x4cb   :  { %1128 = vmax.xlane.f32.xlu1 %v1127_v36 }
 0x4cc   :  { %v5816_v38 = vadd.f32 %v5811_v30, %v1071_v33 }
 0x4cd   :  { %v686_v41 = vpop.f32.mrb[8].mxu1 }
 0x4ce   :  { %v1072_v42 = vmul.f32 0.25, %v686_v41  ;;  %v4952_v46 = vpop.f32.mrb[9].mxu1  ;;  %v1130_v47 = vsel %vm1126_vm0, %v5816_v38, -inf }
 0x4cf   :  { %1131 = vmax.xlane.f32.xlu0 %v1130_v47 }
 0x4d0   :  { %v5824_v49 = vadd.f32 %v5819_v39, %v1072_v42 }
 0x4d1   :  { %v762_v54 = vpop.f32.mrb[10].mxu1 }
 0x4d2   :  { %v1073_v60 = vmul.f32 0.25, %v762_v54  ;;  %v4957_v61 = vpop.f32.mrb[11].mxu1  ;;  %v1133_v62 = vsel %vm1126_vm0, %v5824_v49, -inf }
 0x4d3   :  { %1134 = vmax.xlane.f32.xlu0 %v1133_v62 }
 0x4d4   :  { %v1121_v63 = vadd.f32 %v5827_v52, %v1073_v60 }
 0x4d6   :  { %v1136_v0 = vsel %vm1126_vm0, %v1121_v63, -inf }
 0x4d7   :  { %1137 = vmax.xlane.f32.xlu1 %v1136_v0 }
 0x52d   :  { %v838_v7 = vpop.f32.mrb[12].mxu1 }
 0x52e   :  { %v1074_v8 = vmul.f32 0.25, %v838_v7  ;;  %v4962_v9 = vpop.f32.mrb[13].mxu1 }
 0x530   :  { %v1122_v11 = vadd.f32 %v5834_v5, %v1074_v8 }
 0x531   :  { %v914_v14 = vpop.f32.mrb[14].mxu1 }
 0x532   :  { %v1075_v15 = vmul.f32 0.25, %v914_v14  ;;  %v4967_v18 = vpop.f32.mrb[15].mxu1  ;;  %v1139_v19 = vsel %vm1126_vm0, %v1122_v11, -inf }
 0x533   :  { %1140 = vmax.xlane.f32.xlu0 %v1139_v19 }
 0x534   :  { %v990_v16 = vpop.f32.mrb[4].mxu0  ;;  %v1123_v21 = vadd.f32 %v5838_v12, %v1075_v15 }
 0x535   :  { %v1076_v25 = vmul.f32 0.25, %v990_v16  ;;  %v1066_v27 = vpop.f32.mrb[16].mxu1  ;;  %v4972_v28 = vpop.f32.mrb[5].mxu0 }
 0x536   :  { %v1077_v31 = vmul.f32 0.25, %v1066_v27  ;;  %v4977_v32 = vpop.f32.mrb[17].mxu1  ;;  %v1142_v33 = vsel %vm1126_vm0, %v1123_v21, -inf }
 0x537   :  { %1143 = vmax.xlane.f32.xlu1 %v1142_v33  ;;  %v1124_v34 = vadd.f32 %v5842_v20, %v1076_v25 }
 0x538   :  { %v1125_v36 = vadd.f32 %v5846_v24, %v1077_v31 }
 0x539   :  { %v1145_v40 = vsel %vm1126_vm0, %v1124_v34, -inf }
 0x53a   :  { %1146 = vmax.xlane.f32.xlu0 %v1145_v40  ;;  %v1148_v41 = vsel %vm1126_vm0, %v1125_v36, -inf }
 0x53b   :  { %1149 = vmax.xlane.f32.xlu1 %v1148_v41 }
 0x54c   :  { %1291 = vrot.lane.b32.xlu1 %v5702_v48, %s5522_s1 }
 0x550   :  { %1367 = vrot.lane.b32.xlu1 %v5718_v55, %s5522_s1  ;;  %1215 = vrot.lane.b32.xlu0 %v5706_v51, %s5522_s1 }
 0x554   :  { %1519 = vrot.lane.b32.xlu1 %v5736_v57, %s5522_s1  ;;  %1443 = vrot.lane.b32.xlu0 %v5716_v53, %s5522_s1 }
 0x558   :  { %1595 = vrot.lane.b32.xlu0 %v5732_v56, %s5522_s1  ;;  %v1129_v46 = vpop.xlane.xlu1 %1128 }
 0x559   :  { %v1151_v47 = vsub.f32 %v5808_v29, %v1129_v46 }
 0x55b   :  { %v1159_v60 = vmul.f32 1.442695, %v1151_v47 }
 0x55c   :  { %v1132_v42 = vpop.xlane.xlu0 %1131 }
 0x55d   :  { %v1152_v48 = vsub.f32 %v5816_v38, %v1132_v42  ;;  %5393 = vpow2.f32 %v1159_v60 }
 0x55f   :  { %v1161_v61 = vmul.f32 1.442695, %v1152_v48 }
 0x560   :  { %v1135_v54 = vpop.xlane.xlu0 %1134 }
 0x561   :  { %v1153_v51 = vsub.f32 %v5824_v49, %v1135_v54  ;;  %5395 = vpow2.f32 %v1161_v61 }
 0x563   :  { %v1163_v57 = vmul.f32 1.442695, %v1153_v51 }
 0x564   :  { %v1138_v55 = vpop.xlane.xlu1 %1137 }
 0x565   :  { %v1154_v62 = vsub.f32 %v1121_v63, %v1138_v55  ;;  %5397 = vpow2.f32 %v1163_v57 }
 0x567   :  { %v1165_v53 = vmul.f32 1.442695, %v1154_v62  ;;  %v5394_v56 = vpop.eup %5393 }
 0x568   :  { %v1175_v1 = vsel %vm1126_vm0, %v5394_v56, 0.0 }
 0x569   :  { %5399 = vpow2.f32 %v1165_v53 }
 0x56b   :  { %v5396_v0 = vpop.eup %5395 }
 0x56c   :  { %v1178_v38 = vsel %vm1126_vm0, %v5396_v0, 0.0 }
 0x56f   :  { %v5869_v29 = vpop.eup %5397 }
 0x570   :  { %v1181_v49 = vsel %vm1126_vm0, %v5869_v29, 0.0 }
 0x573   :  { %v5872_v2 = vpop.eup %5399 }
 0x574   :  { %v1184_v63 = vsel %vm1126_vm0, %v5872_v2, 0.0 }
 0x577   :  { %1176 = vadd.xlane.f32.xlu0 %v1175_v1 }
 0x578   :  { %1179 = vadd.xlane.f32.xlu1 %v1178_v38 }
 0x57b   :  { %1182 = vadd.xlane.f32.xlu0 %v1181_v49  ;;  %v331_v49 = vld [vmem:[%s6424_s5] sm:$0xff] }
 0x57c   :  { %1185 = vadd.xlane.f32.xlu1 %v1184_v63  ;;  %v332_v63 = vld [vmem:[%s6424_s5 + $0x8] sm:$0xff] }
 0x5c0   :  { %v1141_v3 = vpop.xlane.xlu0 %1140 }
 0x5c1   :  { %v1155_v4 = vsub.f32 %v1122_v11, %v1141_v3 }
 0x5c3   :  { %v1167_v6 = vmul.f32 1.442695, %v1155_v4 }
 0x5c4   :  { %v1144_v7 = vpop.xlane.xlu1 %1143 }
 0x5c5   :  { %5401 = vpow2.f32 %v1167_v6  ;;  %v1156_v8 = vsub.f32 %v1123_v21, %v1144_v7  ;;  %v5275_v6 = vpack.c.bf16 %v332_v63, %v331_v49 }
 0x5c7   :  { %v1169_v9 = vmul.f32 1.442695, %v1156_v8  ;;  %v1147_v10 = vpop.xlane.xlu0 %1146 }
 0x5c8   :  { %v1150_v13 = vpop.xlane.xlu1 %1149  ;;  %v1157_v14 = vsub.f32 %v1124_v34, %v1147_v10 }
 0x5c9   :  { %5403 = vpow2.f32 %v1169_v9  ;;  %v1158_v15 = vsub.f32 %v1125_v36, %v1150_v13 }
 0x5ca   :  { %v1171_v18 = vmul.f32 1.442695, %v1157_v14  ;;  %v333_v14 = vld [vmem:[%s6424_s5 + $0x10] sm:$0xff] }
 0x5cb   :  { %v1173_v19 = vmul.f32 1.442695, %v1158_v15  ;;  %v1216_v16 = vpop.permute.xlu0 %1215  ;;  %v334_v15 = vld [vmem:[%s6424_s5 + $0x18] sm:$0xff] }
 0x5cc   :  { %5405 = vpow2.f32 %v1171_v18  ;;  %v1292_v25 = vpop.permute.xlu1 %1291  ;;  %4979 = vmatpush3.msra.mxu0 %v1216_v16  ;;  %v5279_v18 = vpack.c.bf16 %v334_v15, %v333_v14 }
 0x5cd   :  { %5407 = vpow2.f32 %v1173_v19  ;;  %4984 = vmatpush3.msra.mxu1 %v1292_v25  ;;  %4988 = vmatprep.subr.mxu0 %v5516_v50 }
 0x5ce   :  { %4993 = vmatprep.subr.mxu1 %v5516_v50 }
 0x5cf   :  { %v5402_v11 = vpop.eup %5401  ;;  %v1444_v36 = vpop.permute.xlu0 %1443 }
 0x5d0   :  { %v1187_v21 = vsel %vm1126_vm0, %v5402_v11, 0.0  ;;  %v1368_v40 = vpop.permute.xlu1 %1367 }
 0x5d1   :  { %1188 = vadd.xlane.f32.xlu0 %v1187_v21 }
 0x5d3   :  { %v5881_v27 = vpop.eup %5403  ;;  %v1596_v41 = vpop.permute.xlu0 %1595 }
 0x5d4   :  { %v1190_v28 = vsel %vm1126_vm0, %v5881_v27, 0.0  ;;  %v1520_v42 = vpop.permute.xlu1 %1519 }
 0x5d5   :  { %1191 = vadd.xlane.f32.xlu1 %v1190_v28 }
 0x5d6   :  { %v5885_v31 = vpop.eup %5405 }
 0x5d7   :  { %v5887_v32 = vpop.eup %5407  ;;  %v1193_v33 = vsel %vm1126_vm0, %v5885_v31, 0.0 }
 0x5d8   :  { %v1196_v34 = vsel %vm1126_vm0, %v5887_v32, 0.0  ;;  %1194 = vadd.xlane.f32.xlu0 %v1193_v33 }
 0x5d9   :  { %1197 = vadd.xlane.f32.xlu1 %v1196_v34 }
 0x5ea   :  { %1671 = vrot.lane.b32.xlu1 %v5742_v59, %s5522_s1 }
 0x5ee   :  { %1747 = vrot.lane.b32.xlu0 %v5740_v58, %s5522_s1 }
 0x604   :  { %v1177_v46 = vpop.xlane.xlu0 %1176 }
 0x605   :  { %v1180_v47 = vpop.xlane.xlu1 %1179  ;;  %5409 = vrcp.f32 %v1177_v46 }
 0x606   :  { %5411 = vrcp.f32 %v1180_v47 }
 0x608   :  { %v1183_v48 = vpop.xlane.xlu0 %1182 }
 0x609   :  { %v1186_v54 = vpop.xlane.xlu1 %1185  ;;  %5413 = vrcp.f32 %v1183_v48 }
 0x60a   :  { %5415 = vrcp.f32 %v1186_v54 }
 0x60f   :  { %v5410_v55 = vpop.eup %5409 }
 0x610   :  { %v5412_v60 = vpop.eup %5411  ;;  %v1200_v51 = vmul.f32 %v5410_v55, %v5394_v56 }
 0x611   :  { %v1202_v61 = vmul.f32 %v5412_v60, %v5396_v0  ;;  %v1923_v60 = vrot.slane %v5698_v45, %v5675_v26 }
 0x612   :  { %4981 = vmatmul.mubr.msk.f32.vlgmr.msra.gmra.mrb[6].mxu0 %vm1126_vm0, %v1200_v51 }
 0x613   :  { %v5414_v59 = vpop.eup %5413  ;;  %4986 = vmatmul.mubr.msk.f32.vlgmr.msra.gmra.mrb[18].mxu1 %vm1126_vm0, %v1202_v61  ;;  %4989 = vmatpush3.msra.mxu0 %v1368_v40 }
 0x614   :  { %v5416_v58 = vpop.eup %5415  ;;  %v1204_v62 = vmul.f32 %v5414_v59, %v5869_v29  ;;  %4994 = vmatpush3.msra.mxu1 %v1444_v36  ;;  %4990 = vmatprep.mubr.msk.f32.mxu0 %vm5518_vm13, %v5516_v50 }
 0x615   :  { %v1206_v57 = vmul.f32 %v5416_v58, %v5872_v2  ;;  %4995 = vmatprep.mubr.msk.f32.mxu1 %vm5518_vm13, %v5516_v50  ;;  %4998 = vmatprep.subr.mxu0 %v5516_v50 }
 0x616   :  { %5003 = vmatprep.subr.mxu1 %v5516_v50  ;;  %4991 = vmatmul.mubr.msk.f32.vlgmr.msra.gmra.mrb[8].mxu0 %vm1126_vm0, %v1204_v62 }
 0x617   :  { %4996 = vmatmul.mubr.msk.f32.vlgmr.msra.gmra.mrb[20].mxu1 %vm1126_vm0, %v1206_v57  ;;  %4999 = vmatpush3.msra.mxu0 %v1520_v42 }
 0x618   :  { %5004 = vmatpush3.msra.mxu1 %v1596_v41  ;;  %5000 = vmatprep.mubr.msk.f32.mxu0 %vm5518_vm13, %v5516_v50 }
 0x619   :  { %5008 = vmatprep.subr.mxu0 %v5516_v50  ;;  %5005 = vmatprep.mubr.msk.f32.mxu1 %vm5518_vm13, %v5516_v50 }
 0x61a   :  { %5013 = vmatprep.subr.mxu1 %v5516_v50 }
 0x65e   :  { %v1189_v53 = vpop.xlane.xlu0 %1188 }
 0x65f   :  { %5417 = vrcp.f32 %v1189_v53 }
 0x662   :  { %v1192_v56 = vpop.xlane.xlu1 %1191 }
 0x663   :  { %5419 = vrcp.f32 %v1192_v56 }
 0x665   :  { %v1195_v0 = vpop.xlane.xlu0 %1194 }
 0x666   :  { %v1198_v1 = vpop.xlane.xlu1 %1197  ;;  %5421 = vrcp.f32 %v1195_v0 }
 0x667   :  { %5423 = vrcp.f32 %v1198_v1 }
 0x669   :  { %v5418_v29 = vpop.eup %5417  ;;  %v1748_v8 = vpop.permute.xlu0 %1747 }
 0x66a   :  { %v1208_v38 = vmul.f32 %v5418_v29, %v5402_v11  ;;  %v1672_v2 = vpop.permute.xlu1 %1671 }
 0x66c   :  { %5001 = vmatmul.mubr.msk.f32.vlgmr.msra.gmra.mrb[10].mxu0 %vm1126_vm0, %v1208_v38 }
 0x66d   :  { %v5420_v3 = vpop.eup %5419  ;;  %5009 = vmatpush3.msra.mxu0 %v1672_v2  ;;  %5010 = vmatprep.mubr.msk.f32.mxu0 %vm5518_vm13, %v5516_v50 }
 0x66e   :  { %v1210_v4 = vmul.f32 %v5420_v3, %v5881_v27  ;;  %5280 = vmatprep.subr.bf16.mxu0 %v5279_v18 }
 0x670   :  { %v5422_v7 = vpop.eup %5421  ;;  %5006 = vmatmul.mubr.msk.f32.vlgmr.msra.gmra.mrb[22].mxu1 %vm1126_vm0, %v1210_v4 }
 0x671   :  { %v5424_v9 = vpop.eup %5423  ;;  %v1212_v10 = vmul.f32 %v5422_v7, %v5885_v31  ;;  %5014 = vmatpush3.msra.mxu1 %v1748_v8  ;;  %5015 = vmatprep.mubr.msk.f32.mxu1 %vm5518_vm13, %v5516_v50 }
 0x672   :  { %v1214_v13 = vmul.f32 %v5424_v9, %v5887_v32  ;;  %5276 = vmatprep.subr.bf16.mxu1 %v5275_v6 }
 0x673   :  { %5011 = vmatmul.mubr.msk.f32.vlgmr.msra.gmra.mrb[12].mxu0 %vm1126_vm0, %v1212_v10 }
 0x674   :  { %5016 = vmatmul.mubr.msk.f32.vlgmr.msra.gmra.mrb[24].mxu1 %vm1126_vm0, %v1214_v13  ;;  %5282 = vmatpush3.bf16.msra.mxu0 %v5279_v18 }
 0x675   :  { %5278 = vmatpush3.bf16.msra.mxu1 %v5275_v6 }
 0x6e5   :  { %v1287_v19 = vpop.f32.mrb[6].mxu0 }
 0x6e6   :  { %v1363_v16 = vpop.f32.mrb[18].mxu1  ;;  %v4982_v25 = vpop.f32.mrb[7].mxu0  ;;  %5022 = vmatprep.mubr.msk.f32.mxu1 %vm463_vm14, %v1287_v19 }
 0x6e7   :  { %v4987_v11 = vpop.f32.mrb[19].mxu1  ;;  %5023 = vmatmul.mubr.msk.f32.vlgmr.msra.gmra.mrb[26].mxu1 %vm463_vm14, %v1363_v16 }
 0x6e9   :  { %v1439_v21 = vpop.f32.mrb[8].mxu0 }
 0x6ea   :  { %v1515_v27 = vpop.f32.mrb[20].mxu1  ;;  %v4992_v28 = vpop.f32.mrb[9].mxu0  ;;  %5025 = vmatprep.mubr.msk.f32.mxu1 %vm463_vm14, %v1439_v21 }
 0x6eb   :  { %v4997_v31 = vpop.f32.mrb[21].mxu1  ;;  %5026 = vmatmul.mubr.msk.f32.gmra.mrb[28].mxu1 %vm463_vm14, %v1515_v27 }
 0x73f   :  { %v1591_v32 = vpop.f32.mrb[10].mxu0 }
 0x740   :  { %v5002_v33 = vpop.f32.mrb[11].mxu0  ;;  %5032 = vmatprep.mubr.msk.f32.mxu0 %vm463_vm14, %v1591_v32 }
 0x743   :  { %v1667_v34 = vpop.f32.mrb[22].mxu1 }
 0x744   :  { %v5007_v36 = vpop.f32.mrb[23].mxu1  ;;  %5033 = vmatmul.mubr.msk.f32.vlgmr.msra.gmra.mrb[14].mxu0 %vm463_vm14, %v1667_v34  ;;  %v335_v34 = vld [vmem:[%s6425_s6] sm:$0xff] }
 0x745   :  { %v336_v36 = vld [vmem:[%s6425_s6 + $0x8] sm:$0xff] }
 0x746   :  { %v1743_v40 = vpop.f32.mrb[12].mxu0 }
 0x747   :  { %v1819_v41 = vpop.f32.mrb[24].mxu1  ;;  %v5012_v42 = vpop.f32.mrb[13].mxu0  ;;  %5035 = vmatprep.mubr.msk.f32.mxu0 %vm463_vm14, %v1743_v40  ;;  %v5283_v40 = vpack.c.bf16 %v336_v36, %v335_v34 }
 0x748   :  { %v5017_v46 = vpop.f32.mrb[25].mxu1  ;;  %5036 = vmatmul.mubr.msk.f32.gmra.mrb[16].mxu0 %vm463_vm14, %v1819_v41  ;;  %v337_v41 = vld [vmem:[%s6425_s6 + $0x10] sm:$0xff]  ;;  %v338_v42 = vld [vmem:[%s6425_s6 + $0x18] sm:$0xff] }
 0x749   :  { %5284 = vmatprep.subr.bf16.mxu1 %v5283_v40  ;;  %v5287_v46 = vpack.c.bf16 %v338_v42, %v337_v41 }
 0x74a   :  { %5286 = vmatpush3.bf16.msra.mxu1 %v5283_v40 }
 0x74b   :  { %5288 = vmatprep.subr.bf16.mxu1 %v5287_v46 }
 0x74e   :  { %5290 = vmatpush3.bf16.msra.mxu1 %v5287_v46 }
 0x7ba   :  { %v5024_v47 = vpop.f32.mrb[26].mxu1 }
 0x7bb   :  { %v1901_v48 = vpop.f32.mrb[27].mxu1  ;;  %v1925_v51 = vadd.f32 %v5024_v47, %v1923_v60 }
 0x7bc   :  { %v1924_v61 = vadd.f32 %v1923_v60, %v1901_v48 }
 0x7be   :  { %v5027_v54 = vpop.f32.mrb[28].mxu1 }
 0x7bf   :  { %v1911_v55 = vpop.f32.mrb[29].mxu1  ;;  %v1927_v53 = vadd.f32 %v5027_v54, %v1923_v60 }
 0x7c0   :  { %v1926_v0 = vadd.f32 %v1923_v60, %v1911_v55 }
 0x817   :  { %v5034_v59 = vpop.f32.mrb[14].mxu0 }
 0x818   :  { %v2026_v58 = vadd.f32 %v5034_v59, %v1925_v51  ;;  %v2006_v62 = vpop.f32.mrb[15].mxu0 }
 0x819   :  { %v2025_v57 = vadd.f32 %v2006_v62, %v1924_v61 }
 0x81a   :  { %v2030_v56 = vadd.f32 %v2026_v58, %v5681_v37 }
 0x81b   :  { %v5037_v1 = vpop.f32.mrb[16].mxu0  ;;  %v2029_v29 = vadd.f32 %v2025_v57, %v5679_v35 }
 0x81c   :  { %v2028_v38 = vadd.f32 %v5037_v1, %v1927_v53  ;;  %v2016_v2 = vpop.f32.mrb[17].mxu0  ;;  %v2036_v49 = vsel %vm190_vm12, %v2030_v56, 0.0 }
 0x81d   :  { %v2027_v63 = vadd.f32 %v2016_v2, %v1926_v0  ;;  %2037 = vadd.xlane.f32.xlu0 %v2036_v49  ;;  %v2033_v3 = vsel %vm190_vm12, %v2029_v29, 0.0  ;;  %v2095_v0 = vsub.s32 5, %v5666_v17 }
 0x81e   :  { %2034 = vadd.xlane.f32.xlu1 %v2033_v3  ;;  %v2032_v4 = vadd.f32 %v2028_v38, %v5689_v44 }
 0x81f   :  { %v2031_v6 = vadd.f32 %v2027_v63, %v5687_v43  ;;  %v2096_v63 = vrot.slane %v5698_v45, %v2095_v0 }
 0x820   :  { %v2042_v7 = vsel %vm190_vm12, %v2032_v4, 0.0 }
 0x821   :  { %v2039_v37 = vsel %vm190_vm12, %v2031_v6, 0.0 }
 0x822   :  { %2043 = vadd.xlane.f32.xlu1 %v2042_v7  ;;  %2040 = vadd.xlane.f32.xlu0 %v2039_v37 }
 0x8aa   :  { %v2038_v35 = vpop.xlane.xlu0 %2037 }
 0x8ab   :  { %v2046_v8 = vmul.f32 0.03125, %v2038_v35  ;;  %v2035_v9 = vpop.xlane.xlu1 %2034 }
 0x8ac   :  { %v2045_v10 = vmul.f32 0.03125, %v2035_v9 }
 0x8ad   :  { %v2050_v13 = vsub.f32 %v2030_v56, %v2046_v8  ;;  %v5973_v56 = vsub.s32 4, %v5666_v17 }
 0x8ae   :  { %v2049_v14 = vsub.f32 %v2029_v29, %v2045_v10 }
 0x8af   :  { %v2044_v15 = vpop.xlane.xlu1 %2043  ;;  %v2041_v18 = vpop.xlane.xlu0 %2040  ;;  %v2054_v19 = vmul.f32 %v2050_v13, %v2050_v13  ;;  %v2088_v1 = vrot.slane %v5698_v45, %v5973_v56 }
 0x8b0   :  { %v2048_v16 = vmul.f32 0.03125, %v2044_v15  ;;  %v2047_v25 = vmul.f32 0.03125, %v2041_v18  ;;  %v2053_v44 = vmul.f32 %v2049_v14, %v2049_v14  ;;  %v339_v18 = vld [vmem:[%s6426_s7] sm:$0xff] }
 0x8b1   :  { %v2060_v43 = vsel %vm190_vm12, %v2054_v19, 0.0  ;;  %v340_v19 = vld [vmem:[%s6426_s7 + $0x8] sm:$0xff] }
 0x8b2   :  { %v2052_v11 = vsub.f32 %v2032_v4, %v2048_v16  ;;  %v2051_v21 = vsub.f32 %v2031_v6, %v2047_v25  ;;  %2061 = vadd.xlane.f32.xlu1 %v2060_v43  ;;  %v2057_v27 = vsel %vm190_vm12, %v2053_v44, 0.0  ;;  %v5291_v16 = vpack.c.bf16 %v340_v19, %v339_v18  ;;  %v341_v25 = vld [vmem:[%s6426_s7 + $0x10] sm:$0xff]  ;;  %v342_v44 = vld [vmem:[%s6426_s7 + $0x18] sm:$0xff] }
 0x8b3   :  { %2058 = vadd.xlane.f32.xlu0 %v2057_v27  ;;  %v5295_v43 = vpack.c.bf16 %v342_v44, %v341_v25 }
 0x8b4   :  { %v2056_v28 = vmul.f32 %v2052_v11, %v2052_v11  ;;  %v2055_v31 = vmul.f32 %v2051_v21, %v2051_v21  ;;  %5292 = vmatprep.subr.bf16.mxu1 %v5291_v16 }
 0x8b6   :  { %v2066_v32 = vsel %vm190_vm12, %v2056_v28, 0.0  ;;  %v2063_v33 = vsel %vm190_vm12, %v2055_v31, 0.0  ;;  %v345_v28 = vld [vmem:[%s6426_s7 + $0x30] sm:$0xff]  ;;  %v346_v31 = vld [vmem:[%s6426_s7 + $0x38] sm:$0xff] }
 0x8b7   :  { %2067 = vadd.xlane.f32.xlu1 %v2066_v32  ;;  %2064 = vadd.xlane.f32.xlu0 %v2063_v33  ;;  %v5303_v32 = vpack.c.bf16 %v346_v31, %v345_v28  ;;  %v6023_v33 = vsub.s32 2, %v5666_v17 }
 0x8b9   :  { %v2104_v34 = vrot.slane %v5698_v45, %v6023_v33 }
 0x93f   :  { %v2062_v47 = vpop.xlane.xlu1 %2061 }
 0x940   :  { %v2070_v48 = vmul.f32 0.03125, %v2062_v47  ;;  %v2059_v54 = vpop.xlane.xlu0 %2058 }
 0x941   :  { %v2069_v55 = vmul.f32 0.03125, %v2059_v54 }
 0x942   :  { %v2074_v60 = vadd.f32 1e-12, %v2070_v48 }
 0x943   :  { %v2073_v51 = vadd.f32 1e-12, %v2069_v55 }
 0x944   :  { %5425 = vrsqrt.f32 %v2074_v60  ;;  %v2068_v61 = vpop.xlane.xlu1 %2067  ;;  %v2065_v59 = vpop.xlane.xlu0 %2064 }
 0x945   :  { %5427 = vrsqrt.f32 %v2073_v51  ;;  %v2072_v58 = vmul.f32 0.03125, %v2068_v61  ;;  %v2071_v62 = vmul.f32 0.03125, %v2065_v59 }
 0x947   :  { %v2076_v57 = vadd.f32 1e-12, %v2072_v58  ;;  %v2075_v53 = vadd.f32 1e-12, %v2071_v62 }
 0x949   :  { %5429 = vrsqrt.f32 %v2076_v57 }
 0x94a   :  { %5431 = vrsqrt.f32 %v2075_v53 }
 0x94e   :  { %v5426_v29 = vpop.eup %5425 }
 0x94f   :  { %v5428_v38 = vpop.eup %5427  ;;  %v2082_v2 = vmul.f32 %v5426_v29, %v2050_v13 }
 0x950   :  { %v2081_v49 = vmul.f32 %v5428_v38, %v2049_v14 }
 0x951   :  { %v2090_v3 = vmul.f32 %v2088_v1, %v2082_v2 }
 0x952   :  { %v2089_v4 = vmul.f32 %v2088_v1, %v2081_v49 }
 0x953   :  { %v5430_v6 = vpop.eup %5429  ;;  %v5983_v8 = vadd.f32 %v2096_v63, %v2090_v3 }
 0x954   :  { %v5432_v7 = vpop.eup %5431  ;;  %v5981_v37 = vadd.f32 %v2096_v63, %v2089_v4  ;;  %v2084_v35 = vmul.f32 %v5430_v6, %v2052_v11  ;;  %v343_v11 = vld [vmem:[%s6426_s7 + $0x20] sm:$0xff] }
 0x955   :  { %v2083_v9 = vmul.f32 %v5432_v7, %v2051_v21  ;;  %v344_v21 = vld [vmem:[%s6426_s7 + $0x28] sm:$0xff] }
 0x956   :  { %5046 = vmatprep.mubr.msk.f32.mxu1 %vm190_vm12, %v5981_v37  ;;  %v2092_v10 = vmul.f32 %v2088_v1, %v2084_v35  ;;  %v5299_v27 = vpack.c.bf16 %v344_v21, %v343_v11 }
 0x957   :  { %5047 = vmatmul.mubr.msk.f32.vlgmr.msra.gmra.mrb[30].mxu1 %vm190_vm12, %v5983_v8  ;;  %v2091_v13 = vmul.f32 %v2088_v1, %v2083_v9 }
 0x958   :  { %v5991_v15 = vadd.f32 %v2096_v63, %v2092_v10  ;;  %5294 = vmatpush3.bf16.msra.mxu1 %v5291_v16 }
 0x959   :  { %v5989_v14 = vadd.f32 %v2096_v63, %v2091_v13  ;;  %5296 = vmatprep.subr.bf16.mxu1 %v5295_v43 }
 0x95b   :  { %5049 = vmatprep.mubr.msk.f32.mxu1 %vm190_vm12, %v5989_v14 }
 0x95c   :  { %5050 = vmatmul.mubr.msk.f32.gmra.mrb[32].mxu1 %vm190_vm12, %v5991_v15 }
 0x95d   :  { %5298 = vmatpush3.bf16.msra.mxu1 %v5295_v43 }
 0x95e   :  { %5300 = vmatprep.subr.bf16.mxu1 %v5299_v27 }
 0x961   :  { %5302 = vmatpush3.bf16.msra.mxu1 %v5299_v27 }
 0x962   :  { %5304 = vmatprep.subr.bf16.mxu1 %v5303_v32 }
 0x965   :  { %5306 = vmatpush3.bf16.msra.mxu1 %v5303_v32 }
 0x966   :  { %5098 = vmatprep.subr.mxu1 %v5516_v50 }
 0xa2a   :  { %v5048_v36 = vpop.f32.mrb[30].mxu1 }
 0xa2b   :  { %v2189_v40 = vadd.f32 %v5048_v36, %v2104_v34  ;;  %v2183_v41 = vpop.f32.mrb[31].mxu1  ;;  %v6039_v36 = vld [vmem:[%s6422_s8] sm:$0xff] }
 0xa2c   :  { %v2184_v42 = vadd.f32 %v2183_v41, %v2104_v34 }
 0xa2d   :  { %v2207_v46 = vmul.f32 0.044715, %v2189_v40  ;;  %v2203_v19 = vmul.f32 0.5, %v2189_v40 }
 0xa2e   :  { %v2206_v47 = vmul.f32 0.044715, %v2184_v42  ;;  %v2202_v13 = vmul.f32 0.5, %v2184_v42 }
 0xa2f   :  { %v2211_v48 = vmul.f32 %v2207_v46, %v2189_v40  ;;  %v5051_v54 = vpop.f32.mrb[32].mxu1 }
 0xa30   :  { %v2210_v55 = vmul.f32 %v2206_v47, %v2184_v42  ;;  %v2199_v60 = vadd.f32 %v5051_v54, %v2104_v34  ;;  %v2193_v51 = vpop.f32.mrb[33].mxu1 }
 0xa31   :  { %v2215_v61 = vmul.f32 %v2211_v48, %v2189_v40  ;;  %v2194_v59 = vadd.f32 %v2193_v51, %v2104_v34  ;;  %v6034_v34 = vsub.s32 3, %v5666_v17 }
 0xa32   :  { %v2214_v58 = vmul.f32 %v2210_v55, %v2184_v42  ;;  %v2209_v62 = vmul.f32 0.044715, %v2199_v60  ;;  %v2205_v28 = vmul.f32 0.5, %v2199_v60 }
 0xa33   :  { %v2219_v57 = vadd.f32 %v2215_v61, %v2189_v40  ;;  %v2208_v53 = vmul.f32 0.044715, %v2194_v59  ;;  %v2204_v21 = vmul.f32 0.5, %v2194_v59  ;;  %v2241_v40 = vrot.slane %v6039_v36, %v6034_v34 }
 0xa34   :  { %v2218_v1 = vadd.f32 %v2214_v58, %v2184_v42  ;;  %v2213_v29 = vmul.f32 %v2209_v62, %v2199_v60 }
 0xa35   :  { %v2223_v45 = vmul.f32 0.7978846, %v2219_v57  ;;  %v2212_v38 = vmul.f32 %v2208_v53, %v2194_v59 }
 0xa36   :  { %v2217_v2 = vmul.f32 %v2213_v29, %v2199_v60  ;;  %v2222_v49 = vmul.f32 0.7978846, %v2218_v1 }
 0xa37   :  { %5433 = vtanh.f32 %v2223_v45  ;;  %v2216_v63 = vmul.f32 %v2212_v38, %v2194_v59 }
 0xa38   :  { %v2221_v3 = vadd.f32 %v2217_v2, %v2199_v60  ;;  %5435 = vtanh.f32 %v2222_v49 }
 0xa39   :  { %v2220_v4 = vadd.f32 %v2216_v63, %v2194_v59 }
 0xa3a   :  { %v2225_v6 = vmul.f32 0.7978846, %v2221_v3 }
 0xa3b   :  { %v2224_v7 = vmul.f32 0.7978846, %v2220_v4 }
 0xa3c   :  { %5437 = vtanh.f32 %v2225_v6 }
 0xa3d   :  { %5439 = vtanh.f32 %v2224_v7 }
 0xa41   :  { %v5434_v35 = vpop.eup %5433 }
 0xa42   :  { %v5436_v9 = vpop.eup %5435  ;;  %v2231_v10 = vadd.f32 1.0, %v5434_v35 }
 0xa43   :  { %v2230_v18 = vadd.f32 1.0, %v5436_v9 }
 0xa44   :  { %v2235_v44 = vmul.f32 %v2231_v10, %v2203_v19 }
 0xa45   :  { %v2234_v16 = vmul.f32 %v2230_v18, %v2202_v13 }
 0xa46   :  { %v5438_v25 = vpop.eup %5437 }
 0xa47   :  { %v5440_v43 = vpop.eup %5439  ;;  %5068 = vmatprep.mubr.msk.f32.mxu1 %vm2242_vm1, %v2234_v16  ;;  %v2233_v11 = vadd.f32 1.0, %v5438_v25  ;;  %v4650_v16 = vld [vmem:[%s6420_s4 + $0x20] sm:$0xff]  ;;  %v4651_v25 = vld [vmem:[%s6420_s4 + $0x28] sm:$0xff] }
 0xa48   :  { %5069 = vmatmul.mubr.msk.f32.vlgmr.msra.gmra.mrb[34].mxu1 %vm2242_vm1, %v2235_v44  ;;  %v2232_v27 = vadd.f32 1.0, %v5440_v43  ;;  %v5307_v44 = vpack.c.bf16 %v4651_v25, %v4650_v16  ;;  %v4652_v43 = vld [vmem:[%s6420_s4 + $0x30] sm:$0xff] }
 0xa49   :  { %v2237_v32 = vmul.f32 %v2233_v11, %v2205_v28  ;;  %v4653_v11 = vld [vmem:[%s6420_s4 + $0x38] sm:$0xff] }
 0xa4a   :  { %v2236_v31 = vmul.f32 %v2232_v27, %v2204_v21  ;;  %5308 = vmatprep.subr.bf16.mxu0 %v5307_v44  ;;  %v5311_v21 = vpack.c.bf16 %v4653_v11, %v4652_v43 }
 0xa4b   :  { %5310 = vmatpush3.bf16.msra.mxu0 %v5307_v44 }
 0xa4c   :  { %5071 = vmatprep.mubr.msk.f32.mxu1 %vm2242_vm1, %v2236_v31  ;;  %5312 = vmatprep.subr.bf16.mxu0 %v5311_v21 }
 0xa4d   :  { %5072 = vmatmul.mubr.msk.f32.gmra.mrb[36].mxu1 %vm2242_vm1, %v2237_v32 }
 0xa4e   :  { %5100 = vmatprep.mubr.msk.f32.mxu1 %vm5518_vm13, %v5516_v50 }
 0xa4f   :  { %5314 = vmatpush3.bf16.msra.mxu0 %v5311_v21 }
 0xa50   :  { %5088 = vmatprep.subr.mxu0 %v5516_v50 }
 0xb1b   :  { %v5070_v41 = vpop.f32.mrb[34].mxu1 }
 0xb1c   :  { %v2327_v42 = vadd.f32 %v5070_v41, %v2241_v40  ;;  %v2321_v46 = vpop.f32.mrb[35].mxu1 }
 0xb1d   :  { %v2322_v47 = vadd.f32 %v2321_v46, %v2241_v40 }
 0xb1e   :  { %v2341_v48 = vadd.f32 %v2327_v42, %v5983_v8 }
 0xb1f   :  { %v2340_v54 = vadd.f32 %v2322_v47, %v5981_v37 }
 0xb20   :  { %v5073_v55 = vpop.f32.mrb[36].mxu1  ;;  %v2347_v60 = vsel %vm190_vm12, %v2341_v48, 0.0 }
 0xb21   :  { %v2337_v51 = vadd.f32 %v5073_v55, %v2241_v40  ;;  %2348 = vadd.xlane.f32.xlu1 %v2347_v60  ;;  %v2331_v61 = vpop.f32.mrb[37].mxu1  ;;  %v2344_v59 = vsel %vm190_vm12, %v2340_v54, 0.0  ;;  %v2398_v60 = vsub.s32 6, %v5666_v17 }
 0xb22   :  { %v2332_v58 = vadd.f32 %v2331_v61, %v2241_v40  ;;  %2345 = vadd.xlane.f32.xlu0 %v2344_v59 }
 0xb23   :  { %v2343_v62 = vadd.f32 %v2337_v51, %v5991_v15  ;;  %v2406_v51 = vsub.s32 7, %v5666_v17  ;;  %v2399_v61 = vrot.slane %v6039_v36, %v2398_v60 }
 0xb24   :  { %v2342_v57 = vadd.f32 %v2332_v58, %v5989_v14 }
 0xb25   :  { %v2353_v53 = vsel %vm190_vm12, %v2343_v62, 0.0 }
 0xb26   :  { %2354 = vadd.xlane.f32.xlu1 %v2353_v53  ;;  %v2350_v8 = vsel %vm190_vm12, %v2342_v57, 0.0  ;;  %v2407_v53 = vrot.slane %v6039_v36, %v2406_v51 }
 0xb27   :  { %2351 = vadd.xlane.f32.xlu0 %v2350_v8 }
 0xbae   :  { %v2349_v37 = vpop.xlane.xlu1 %2348 }
 0xbaf   :  { %v2357_v1 = vmul.f32 0.03125, %v2349_v37  ;;  %v2346_v29 = vpop.xlane.xlu0 %2345 }
 0xbb0   :  { %v2356_v45 = vmul.f32 0.03125, %v2346_v29 }
 0xbb1   :  { %v2361_v38 = vsub.f32 %v2341_v48, %v2357_v1 }
 0xbb2   :  { %v2360_v2 = vsub.f32 %v2340_v54, %v2356_v45 }
 0xbb3   :  { %v2355_v49 = vpop.xlane.xlu1 %2354  ;;  %v2365_v63 = vmul.f32 %v2361_v38, %v2361_v38 }
 0xbb4   :  { %v2359_v3 = vmul.f32 0.03125, %v2355_v49  ;;  %v2352_v4 = vpop.xlane.xlu0 %2351  ;;  %v2364_v6 = vmul.f32 %v2360_v2, %v2360_v2 }
 0xbb5   :  { %v2358_v15 = vmul.f32 0.03125, %v2352_v4  ;;  %v2371_v14 = vsel %vm190_vm12, %v2365_v63, 0.0 }
 0xbb6   :  { %v2363_v7 = vsub.f32 %v2343_v62, %v2359_v3  ;;  %2372 = vadd.xlane.f32.xlu1 %v2371_v14  ;;  %v2368_v35 = vsel %vm190_vm12, %v2364_v6, 0.0  ;;  %v6097_v6 = vld [vmem:[%s6422_s8 + $0x8] sm:$0xff] }
 0xbb7   :  { %v2362_v9 = vsub.f32 %v2342_v57, %v2358_v15  ;;  %2369 = vadd.xlane.f32.xlu0 %v2368_v35  ;;  %v2441_v15 = vrot.slane %v6097_v6, %v5669_v23 }
 0xbb8   :  { %v2367_v10 = vmul.f32 %v2363_v7, %v2363_v7 }
 0xbb9   :  { %v2366_v13 = vmul.f32 %v2362_v9, %v2362_v9 }
 0xbba   :  { %v2377_v18 = vsel %vm190_vm12, %v2367_v10, 0.0 }
 0xbbb   :  { %2378 = vadd.xlane.f32.xlu1 %v2377_v18  ;;  %v2374_v19 = vsel %vm190_vm12, %v2366_v13, 0.0 }
 0xbbc   :  { %2375 = vadd.xlane.f32.xlu0 %v2374_v19 }
 0xc43   :  { %v2373_v27 = vpop.xlane.xlu1 %2372 }
 0xc44   :  { %v2381_v28 = vmul.f32 0.03125, %v2373_v27  ;;  %v2370_v31 = vpop.xlane.xlu0 %2369 }
 0xc45   :  { %v2380_v32 = vmul.f32 0.03125, %v2370_v31 }
 0xc46   :  { %v2385_v40 = vadd.f32 1e-12, %v2381_v28 }
 0xc47   :  { %v2384_v41 = vadd.f32 1e-12, %v2380_v32 }
 0xc48   :  { %5441 = vrsqrt.f32 %v2385_v40  ;;  %v2379_v42 = vpop.xlane.xlu1 %2378 }
 0xc49   :  { %5443 = vrsqrt.f32 %v2384_v41  ;;  %v2383_v46 = vmul.f32 0.03125, %v2379_v42  ;;  %v2376_v47 = vpop.xlane.xlu0 %2375 }
 0xc4a   :  { %v2382_v48 = vmul.f32 0.03125, %v2376_v47 }
 0xc4b   :  { %v2387_v54 = vadd.f32 1e-12, %v2383_v46 }
 0xc4c   :  { %v2386_v55 = vadd.f32 1e-12, %v2382_v48 }
 0xc4d   :  { %5445 = vrsqrt.f32 %v2387_v54 }
 0xc4e   :  { %5447 = vrsqrt.f32 %v2386_v55 }
 0xc52   :  { %v5442_v59 = vpop.eup %5441 }
 0xc53   :  { %v5444_v58 = vpop.eup %5443  ;;  %v2393_v62 = vmul.f32 %v5442_v59, %v2361_v38 }
 0xc54   :  { %v2392_v57 = vmul.f32 %v5444_v58, %v2360_v2 }
 0xc55   :  { %v2401_v8 = vmul.f32 %v2399_v61, %v2393_v62 }
 0xc56   :  { %v2400_v37 = vmul.f32 %v2399_v61, %v2392_v57 }
 0xc57   :  { %v5446_v1 = vpop.eup %5445  ;;  %v6078_v63 = vadd.f32 %v2407_v53, %v2401_v8 }
 0xc58   :  { %v5448_v29 = vpop.eup %5447  ;;  %v6076_v45 = vadd.f32 %v2407_v53, %v2400_v37  ;;  %v2395_v49 = vmul.f32 %v5446_v1, %v2363_v7 }
 0xc59   :  { %v2394_v3 = vmul.f32 %v5448_v29, %v2362_v9 }
 0xc5a   :  { %5082 = vmatprep.mubr.msk.f32.mxu0 %vm190_vm12, %v6076_v45  ;;  %v2403_v4 = vmul.f32 %v2399_v61, %v2395_v49 }
 0xc5b   :  { %5083 = vmatmul.mubr.msk.f32.vlgmr.msra.gmra.mrb[18].mxu0 %vm190_vm12, %v6078_v63  ;;  %v2402_v38 = vmul.f32 %v2399_v61, %v2394_v3 }
 0xc5c   :  { %v6086_v36 = vadd.f32 %v2407_v53, %v2403_v4 }
 0xc5d   :  { %v6084_v2 = vadd.f32 %v2407_v53, %v2402_v38 }
 0xc5f   :  { %5085 = vmatprep.mubr.msk.f32.mxu0 %vm190_vm12, %v6084_v2 }
 0xc60   :  { %5086 = vmatmul.mubr.msk.f32.gmra.mrb[20].mxu0 %vm190_vm12, %v6086_v36 }
 0xc61   :  { %5090 = vmatprep.mubr.msk.f32.mxu0 %vm5518_vm13, %v5516_v50 }
 0xd2e   :  { %v5084_v14 = vpop.f32.mrb[18].mxu0 }
 0xd2f   :  { %v6101_v7 = vadd.f32 %v5084_v14, %v2441_v15  ;;  %v2520_v35 = vpop.f32.mrb[19].mxu0 }
 0xd30   :  { %v6103_v9 = vadd.f32 %v2520_v35, %v2441_v15 }
 0xd31   :  { %2545 = vrot.lane.b32.xlu1 %v6101_v7, %s5517_s0 }
 0xd32   :  { %2543 = vrot.lane.b32.xlu0 %v6103_v9, %s5517_s0 }
 0xd33   :  { %v5087_v10 = vpop.f32.mrb[20].mxu0 }
 0xd34   :  { %v6109_v13 = vadd.f32 %v5087_v10, %v2441_v15  ;;  %v2530_v18 = vpop.f32.mrb[21].mxu0 }
 0xd35   :  { %v6111_v19 = vadd.f32 %v2530_v18, %v2441_v15 }
 0xd36   :  { %2549 = vrot.lane.b32.xlu0 %v6109_v13, %s5517_s0 }
 0xd37   :  { %2547 = vrot.lane.b32.xlu1 %v6111_v19, %s5517_s0 }
 0xd3a   :  { %2627 = vrot.lane.b32.xlu0 %v6101_v7, %s5519_s28 }
 0xd3b   :  { %2551 = vrot.lane.b32.xlu1 %v6103_v9, %s5519_s28 }
 0xd3e   :  { %2779 = vrot.lane.b32.xlu0 %v6109_v13, %s5519_s28 }
 0xd3f   :  { %2703 = vrot.lane.b32.xlu1 %v6111_v19, %s5519_s28 }
 0xda3   :  { %v6125_v16 = vpop.permute.xlu1 %2545 }
 0xda4   :  { %2931 = vrot.lane.b32.xlu0 %v6125_v16, %s5519_s28  ;;  %v6129_v25 = vpop.permute.xlu0 %2543 }
 0xda5   :  { %2855 = vrot.lane.b32.xlu1 %v6129_v25, %s5519_s28 }
 0xda8   :  { %v6133_v44 = vpop.permute.xlu0 %2549 }
 0xda9   :  { %v6135_v43 = vpop.permute.xlu1 %2547  ;;  %3083 = vrot.lane.b32.xlu0 %v6133_v44, %s5519_s28 }
 0xdaa   :  { %3007 = vrot.lane.b32.xlu1 %v6135_v43, %s5519_s28 }
 0xdac   :  { %v2628_v21 = vpop.permute.xlu0 %2627 }
 0xdad   :  { %v2552_v11 = vpop.permute.xlu1 %2551 }
 0xdae   :  { %5089 = vmatpush3.xpose.msk.msra.mxu0 %vm463_vm14, %v2552_v11 }
 0xdaf   :  { %5093 = vmatprep.subr.mxu0 %v5516_v50 }
 0xdb0   :  { %v2780_v28 = vpop.permute.xlu0 %2779 }
 0xdb1   :  { %5091 = vmatmul.mubr.msk.f32.vlgmr.msra.gmra.mrb[22].mxu0 %vm463_vm14, %v6103_v9  ;;  %v2704_v27 = vpop.permute.xlu1 %2703 }
 0xdb2   :  { %5094 = vmatpush3.xpose.msk.msra.mxu0 %vm463_vm14, %v2628_v21  ;;  %5099 = vmatpush3.xpose.msk.msra.mxu1 %vm463_vm14, %v2704_v27 }
 0xdb3   :  { %5095 = vmatprep.mubr.msk.f32.mxu0 %vm5518_vm13, %v5516_v50  ;;  %5103 = vmatprep.subr.mxu0 %v5516_v50 }
 0xdb4   :  { %5108 = vmatprep.subr.mxu1 %v5516_v50 }
 0xdb5   :  { %5096 = vmatmul.mubr.msk.f32.vlgmr.msra.gmra.mrb[24].mxu0 %vm463_vm14, %v6101_v7  ;;  %5101 = vmatmul.mubr.msk.f32.vlgmr.msra.gmra.mrb[38].mxu1 %vm463_vm14, %v6111_v19 }
 0xdb6   :  { %5104 = vmatpush3.xpose.msk.msra.mxu0 %vm463_vm14, %v2780_v28  ;;  %5105 = vmatprep.mubr.msk.f32.mxu0 %vm5518_vm13, %v5516_v50 }
 0xdb7   :  { %5113 = vmatprep.subr.mxu0 %v5516_v50  ;;  %5110 = vmatprep.mubr.msk.f32.mxu1 %vm5518_vm13, %v5516_v50 }
 0xdb9   :  { %5106 = vmatmul.mubr.msk.f32.vlgmr.msra.gmra.mrb[26].mxu0 %vm463_vm14, %v6109_v13 }
 0xdba   :  { %5115 = vmatprep.mubr.msk.f32.mxu0 %vm5518_vm13, %v5516_v50 }
 0xe16   :  { %v2932_v31 = vpop.permute.xlu0 %2931 }
 0xe17   :  { %v2856_v32 = vpop.permute.xlu1 %2855  ;;  %5114 = vmatpush3.xpose.msk.msra.mxu0 %vm463_vm14, %v2932_v31 }
 0xe18   :  { %5109 = vmatpush3.xpose.msk.msra.mxu1 %vm463_vm14, %v2856_v32  ;;  %5123 = vmatprep.subr.mxu0 %v5516_v50 }
 0xe19   :  { %5118 = vmatprep.subr.mxu1 %v5516_v50 }
 0xe1a   :  { %5116 = vmatmul.mubr.msk.f32.vlgmr.msra.gmra.mrb[28].mxu0 %vm463_vm14, %v6125_v16 }
 0xe1b   :  { %5111 = vmatmul.mubr.msk.f32.vlgmr.msra.gmra.mrb[40].mxu1 %vm463_vm14, %v6129_v25  ;;  %v3084_v40 = vpop.permute.xlu0 %3083  ;;  %5125 = vmatprep.mubr.msk.f32.mxu0 %vm5518_vm13, %v5516_v50 }
 0xe1c   :  { %v3008_v41 = vpop.permute.xlu1 %3007  ;;  %5124 = vmatpush3.xpose.msk.msra.mxu0 %vm463_vm14, %v3084_v40  ;;  %5120 = vmatprep.mubr.msk.f32.mxu1 %vm5518_vm13, %v5516_v50 }
 0xe1d   :  { %5119 = vmatpush3.xpose.msk.msra.mxu1 %vm463_vm14, %v3008_v41  ;;  %5133 = vmatprep.subr.mxu0 %v5516_v50 }
 0xe1e   :  { %5128 = vmatprep.subr.mxu1 %v5516_v50 }
 0xe1f   :  { %5126 = vmatmul.mubr.msk.f32.vlgmr.msra.gmra.mrb[30].mxu0 %vm463_vm14, %v6133_v44 }
 0xe20   :  { %5121 = vmatmul.mubr.msk.f32.vlgmr.msra.gmra.mrb[42].mxu1 %vm463_vm14, %v6135_v43  ;;  %5135 = vmatprep.mubr.msk.f32.mxu0 %vm5518_vm13, %v5516_v50 }
 0xe21   :  { %5130 = vmatprep.mubr.msk.f32.mxu1 %vm5518_vm13, %v5516_v50 }
 0xe84   :  { %v2623_v42 = vpop.f32.mrb[22].mxu0 }
 0xe85   :  { %v3159_v46 = vmul.f32 0.25, %v2623_v42  ;;  %v5092_v47 = vpop.f32.mrb[23].mxu0 }
 0xe87   :  { %v3167_v48 = vadd.f32 %v3159_v46, %v5805_v22 }
 0xe88   :  { %v2699_v54 = vpop.f32.mrb[24].mxu0  ;;  %v2775_v55 = vpop.f32.mrb[38].mxu1 }
 0xe89   :  { %v3160_v61 = vmul.f32 0.25, %v2699_v54  ;;  %v3161_v59 = vmul.f32 0.25, %v2775_v55  ;;  %v5097_v58 = vpop.f32.mrb[25].mxu0  ;;  %v5102_v62 = vpop.f32.mrb[39].mxu1  ;;  %v3175_v57 = vsel %vm1126_vm0, %v3167_v48, -inf }
 0xe8a   :  { %3176 = vmax.xlane.f32.xlu1 %v3175_v57 }
 0xe8b   :  { %v3168_v53 = vadd.f32 %v3160_v61, %v5811_v30  ;;  %v3169_v49 = vadd.f32 %v3161_v59, %v5819_v39 }
 0xe8c   :  { %v2851_v8 = vpop.f32.mrb[26].mxu0 }
 0xe8d   :  { %v3162_v37 = vmul.f32 0.25, %v2851_v8  ;;  %v5107_v1 = vpop.f32.mrb[27].mxu0  ;;  %v3178_v29 = vsel %vm1126_vm0, %v3168_v53, -inf  ;;  %v3181_v3 = vsel %vm1126_vm0, %v3169_v49, -inf }
 0xe8e   :  { %3179 = vmax.xlane.f32.xlu0 %v3178_v29 }
 0xe8f   :  { %v3170_v22 = vadd.f32 %v3162_v37, %v5827_v52 }
 0xe91   :  { %v3184_v4 = vsel %vm1126_vm0, %v3170_v22, -inf }
 0xe92   :  { %3182 = vmax.xlane.f32.xlu0 %v3181_v3  ;;  %3185 = vmax.xlane.f32.xlu1 %v3184_v4 }
 0xeed   :  { %v3003_v38 = vpop.f32.mrb[28].mxu0 }
 0xeee   :  { %v3164_v15 = vmul.f32 0.25, %v3003_v38  ;;  %v2927_v14 = vpop.f32.mrb[40].mxu1  ;;  %v5117_v30 = vpop.f32.mrb[29].mxu0 }
 0xeef   :  { %v3163_v35 = vmul.f32 0.25, %v2927_v14  ;;  %v5112_v10 = vpop.f32.mrb[41].mxu1 }
 0xef0   :  { %v3172_v18 = vadd.f32 %v3164_v15, %v5838_v12 }
 0xef1   :  { %v3171_v11 = vadd.f32 %v3163_v35, %v5834_v5 }
 0xef2   :  { %v3155_v39 = vpop.f32.mrb[30].mxu0  ;;  %v3190_v21 = vsel %vm1126_vm0, %v3172_v18, -inf }
 0xef3   :  { %v3166_v52 = vmul.f32 0.25, %v3155_v39  ;;  %v3079_v27 = vpop.f32.mrb[42].mxu1  ;;  %3191 = vmax.xlane.f32.xlu1 %v3190_v21  ;;  %v5127_v28 = vpop.f32.mrb[31].mxu0  ;;  %v3187_v31 = vsel %vm1126_vm0, %v3171_v11, -inf }
 0xef4   :  { %v3165_v32 = vmul.f32 0.25, %v3079_v27  ;;  %v5122_v40 = vpop.f32.mrb[43].mxu1  ;;  %3188 = vmax.xlane.f32.xlu0 %v3187_v31 }
 0xef5   :  { %v3174_v41 = vadd.f32 %v3166_v52, %v5846_v24 }
 0xef6   :  { %v3173_v42 = vadd.f32 %v3165_v32, %v5842_v20 }
 0xef7   :  { %v3196_v12 = vsel %vm1126_vm0, %v3174_v41, -inf }
 0xef8   :  { %3197 = vmax.xlane.f32.xlu1 %v3196_v12  ;;  %v3193_v5 = vsel %vm1126_vm0, %v3173_v42, -inf }
 0xef9   :  { %3194 = vmax.xlane.f32.xlu0 %v3193_v5 }
 0xf09   :  { %3339 = vrot.lane.b32.xlu1 %v6101_v7, %s5522_s1 }
 0xf0d   :  { %3415 = vrot.lane.b32.xlu1 %v6111_v19, %s5522_s1 }
 0xf0f   :  { %3263 = vrot.lane.b32.xlu0 %v6103_v9, %s5522_s1 }
 0xf11   :  { %3567 = vrot.lane.b32.xlu1 %v6129_v25, %s5522_s1 }
 0xf13   :  { %3491 = vrot.lane.b32.xlu0 %v6109_v13, %s5522_s1 }
 0xf17   :  { %3643 = vrot.lane.b32.xlu0 %v6125_v16, %s5522_s1  ;;  %v3177_v24 = vpop.xlane.xlu1 %3176 }
 0xf18   :  { %v3199_v47 = vsub.f32 %v3167_v48, %v3177_v24 }
 0xf1a   :  { %v3207_v61 = vmul.f32 1.442695, %v3199_v47 }
 0xf1b   :  { %v3180_v20 = vpop.xlane.xlu0 %3179 }
 0xf1c   :  { %v3200_v46 = vsub.f32 %v3168_v53, %v3180_v20 }
 0xf1e   :  { %v3209_v55 = vmul.f32 1.442695, %v3200_v46 }
 0xf1f   :  { %v3186_v7 = vpop.xlane.xlu1 %3185  ;;  %v3183_v54 = vpop.xlane.xlu0 %3182 }
 0xf20   :  { %v3202_v19 = vsub.f32 %v3170_v22, %v3186_v7  ;;  %v3201_v59 = vsub.f32 %v3169_v49, %v3183_v54  ;;  %5449 = vpow2.f32 %v3209_v55 }
 0xf21   :  { %5451 = vpow2.f32 %v3207_v61 }
 0xf22   :  { %v3213_v9 = vmul.f32 1.442695, %v3202_v19  ;;  %v3211_v25 = vmul.f32 1.442695, %v3201_v59 }
 0xf24   :  { %5453 = vpow2.f32 %v3213_v9 }
 0xf25   :  { %5455 = vpow2.f32 %v3211_v25 }
 0xf2a   :  { %v5450_v13 = vpop.eup %5449 }
 0xf2b   :  { %v5452_v58 = vpop.eup %5451  ;;  %v3226_v16 = vsel %vm1126_vm0, %v5450_v13, 0.0 }
 0xf2c   :  { %v3223_v48 = vsel %vm1126_vm0, %v5452_v58, 0.0 }
 0xf2e   :  { %v6218_v62 = vpop.eup %5453 }
 0xf2f   :  { %v6221_v57 = vpop.eup %5455  ;;  %v3232_v53 = vsel %vm1126_vm0, %v6218_v62, 0.0 }
 0xf30   :  { %v3229_v8 = vsel %vm1126_vm0, %v6221_v57, 0.0 }
 0xf35   :  { %3227 = vadd.xlane.f32.xlu1 %v3226_v16  ;;  %v4655_v16 = vld [vmem:[%s6424_s5 + $0x28] sm:$0xff] }
 0xf36   :  { %3224 = vadd.xlane.f32.xlu0 %v3223_v48 }
 0xf39   :  { %3233 = vadd.xlane.f32.xlu1 %v3232_v53 }
 0xf3a   :  { %3230 = vadd.xlane.f32.xlu0 %v3229_v8 }
 0xf80   :  { %v3192_v37 = vpop.xlane.xlu1 %3191 }
 0xf81   :  { %v3204_v1 = vsub.f32 %v3172_v18, %v3192_v37  ;;  %v3189_v29 = vpop.xlane.xlu0 %3188 }
 0xf82   :  { %v3203_v49 = vsub.f32 %v3171_v11, %v3189_v29  ;;  %v4656_v29 = vld [vmem:[%s6424_s5 + $0x30] sm:$0xff] }
 0xf83   :  { %v3217_v22 = vmul.f32 1.442695, %v3204_v1 }
 0xf84   :  { %v3215_v3 = vmul.f32 1.442695, %v3203_v49  ;;  %v4657_v49 = vld [vmem:[%s6424_s5 + $0x38] sm:$0xff] }
 0xf85   :  { %5457 = vpow2.f32 %v3217_v22  ;;  %v3198_v4 = vpop.xlane.xlu1 %3197 }
 0xf86   :  { %5459 = vpow2.f32 %v3215_v3  ;;  %v3206_v38 = vsub.f32 %v3174_v41, %v3198_v4  ;;  %v3195_v15 = vpop.xlane.xlu0 %3194 }
 0xf87   :  { %v3205_v14 = vsub.f32 %v3173_v42, %v3195_v15  ;;  %v5319_v15 = vpack.c.bf16 %v4657_v49, %v4656_v29 }
 0xf88   :  { %v3221_v30 = vmul.f32 1.442695, %v3206_v38 }
 0xf89   :  { %v3219_v35 = vmul.f32 1.442695, %v3205_v14  ;;  %v3340_v10 = vpop.permute.xlu1 %3339 }
 0xf8a   :  { %5461 = vpow2.f32 %v3221_v30  ;;  %5134 = vmatpush3.msra.mxu0 %v3340_v10  ;;  %v3264_v39 = vpop.permute.xlu0 %3263 }
 0xf8b   :  { %5463 = vpow2.f32 %v3219_v35  ;;  %5129 = vmatpush3.msra.mxu1 %v3264_v39  ;;  %5143 = vmatprep.subr.mxu0 %v5516_v50 }
 0xf8c   :  { %5138 = vmatprep.subr.mxu1 %v5516_v50 }
 0xf8d   :  { %v3416_v40 = vpop.permute.xlu1 %3415 }
 0xf8e   :  { %v3492_v41 = vpop.permute.xlu0 %3491 }
 0xf8f   :  { %v5458_v18 = vpop.eup %5457 }
 0xf90   :  { %v5460_v11 = vpop.eup %5459  ;;  %v3238_v21 = vsel %vm1126_vm0, %v5458_v18, 0.0 }
 0xf91   :  { %3239 = vadd.xlane.f32.xlu1 %v3238_v21  ;;  %v3235_v52 = vsel %vm1126_vm0, %v5460_v11, 0.0  ;;  %v3568_v42 = vpop.permute.xlu1 %3567 }
 0xf92   :  { %3236 = vadd.xlane.f32.xlu0 %v3235_v52  ;;  %v3644_v12 = vpop.permute.xlu0 %3643 }
 0xf94   :  { %v6231_v27 = vpop.eup %5461 }
 0xf95   :  { %v6233_v28 = vpop.eup %5463  ;;  %v3244_v31 = vsel %vm1126_vm0, %v6231_v27, 0.0 }
 0xf96   :  { %3245 = vadd.xlane.f32.xlu1 %v3244_v31  ;;  %v3241_v32 = vsel %vm1126_vm0, %v6233_v28, 0.0 }
 0xf97   :  { %3242 = vadd.xlane.f32.xlu0 %v3241_v32 }
 0xfa7   :  { %3719 = vrot.lane.b32.xlu1 %v6135_v43, %s5522_s1 }
 0xfad   :  { %3795 = vrot.lane.b32.xlu0 %v6133_v44, %s5522_s1 }
 0xfc2   :  { %v3228_v5 = vpop.xlane.xlu1 %3227 }
 0xfc3   :  { %5465 = vrcp.f32 %v3228_v5  ;;  %v3225_v20 = vpop.xlane.xlu0 %3224 }
 0xfc4   :  { %5467 = vrcp.f32 %v3225_v20 }
 0xfc6   :  { %v3234_v24 = vpop.xlane.xlu1 %3233 }
 0xfc7   :  { %5469 = vrcp.f32 %v3234_v24  ;;  %v3231_v46 = vpop.xlane.xlu0 %3230 }
 0xfc8   :  { %5471 = vrcp.f32 %v3231_v46 }
 0xfcd   :  { %v5466_v47 = vpop.eup %5465 }
 0xfce   :  { %v5468_v7 = vpop.eup %5467  ;;  %v3250_v54 = vmul.f32 %v5466_v47, %v5450_v13 }
 0xfcf   :  { %v3248_v55 = vmul.f32 %v5468_v7, %v5452_v58  ;;  %v4654_v58 = vld [vmem:[%s6424_s5 + $0x20] sm:$0xff] }
 0xfd0   :  { %5136 = vmatmul.mubr.msk.f32.vlgmr.msra.gmra.mrb[32].mxu0 %vm1126_vm0, %v3250_v54  ;;  %v5315_v8 = vpack.c.bf16 %v4655_v16, %v4654_v58 }
 0xfd1   :  { %v5470_v43 = vpop.eup %5469  ;;  %5144 = vmatpush3.msra.mxu0 %v3492_v41  ;;  %5131 = vmatmul.mubr.msk.f32.vlgmr.msra.gmra.mrb[44].mxu1 %vm1126_vm0, %v3248_v55 }
 0xfd2   :  { %v5472_v44 = vpop.eup %5471  ;;  %v3254_v19 = vmul.f32 %v5470_v43, %v6218_v62  ;;  %5139 = vmatpush3.msra.mxu1 %v3416_v40  ;;  %5145 = vmatprep.mubr.msk.f32.mxu0 %vm5518_vm13, %v5516_v50 }
 0xfd3   :  { %v3252_v61 = vmul.f32 %v5472_v44, %v6221_v57  ;;  %5153 = vmatprep.subr.mxu0 %v5516_v50  ;;  %5140 = vmatprep.mubr.msk.f32.mxu1 %vm5518_vm13, %v5516_v50 }
 0xfd4   :  { %5146 = vmatmul.mubr.msk.f32.vlgmr.msra.gmra.mrb[34].mxu0 %vm1126_vm0, %v3254_v19  ;;  %5148 = vmatprep.subr.mxu1 %v5516_v50 }
 0xfd5   :  { %5154 = vmatpush3.msra.mxu0 %v3644_v12  ;;  %5141 = vmatmul.mubr.msk.f32.vlgmr.msra.gmra.mrb[46].mxu1 %vm1126_vm0, %v3252_v61  ;;  %v3971_v12 = vrot.slane %v6097_v6, %v5675_v26 }
 0xfd6   :  { %5149 = vmatpush3.msra.mxu1 %v3568_v42  ;;  %5155 = vmatprep.mubr.msk.f32.mxu0 %vm5518_vm13, %v5516_v50 }
 0xfd7   :  { %5163 = vmatprep.subr.mxu0 %v5516_v50  ;;  %5150 = vmatprep.mubr.msk.f32.mxu1 %vm5518_vm13, %v5516_v50 }
 0xfd8   :  { %5158 = vmatprep.subr.mxu1 %v5516_v50 }
0x101e   :  { %v3240_v59 = vpop.xlane.xlu1 %3239 }
0x101f   :  { %5473 = vrcp.f32 %v3240_v59  ;;  %v3237_v9 = vpop.xlane.xlu0 %3236 }
0x1020   :  { %5475 = vrcp.f32 %v3237_v9 }
0x1023   :  { %v3246_v25 = vpop.xlane.xlu1 %3245 }
0x1024   :  { %5477 = vrcp.f32 %v3246_v25  ;;  %v3243_v13 = vpop.xlane.xlu0 %3242 }
0x1025   :  { %5479 = vrcp.f32 %v3243_v13 }
0x1027   :  { %v3720_v1 = vpop.permute.xlu1 %3719 }
0x1028   :  { %v3796_v37 = vpop.permute.xlu0 %3795 }
0x1029   :  { %v5474_v62 = vpop.eup %5473 }
0x102a   :  { %v5476_v48 = vpop.eup %5475  ;;  %v3258_v57 = vmul.f32 %v5474_v62, %v5458_v18 }
0x102b   :  { %v3256_v53 = vmul.f32 %v5476_v48, %v5460_v11 }
0x102c   :  { %5156 = vmatmul.mubr.msk.f32.vlgmr.msra.gmra.mrb[36].mxu0 %vm1126_vm0, %v3258_v57 }
0x102d   :  { %5164 = vmatpush3.msra.mxu0 %v3796_v37  ;;  %5151 = vmatmul.mubr.msk.f32.vlgmr.msra.gmra.mrb[48].mxu1 %vm1126_vm0, %v3256_v53 }
0x102e   :  { %v5478_v22 = vpop.eup %5477  ;;  %5159 = vmatpush3.msra.mxu1 %v3720_v1  ;;  %5165 = vmatprep.mubr.msk.f32.mxu0 %vm5518_vm13, %v5516_v50 }
0x102f   :  { %v5480_v3 = vpop.eup %5479  ;;  %v3262_v4 = vmul.f32 %v5478_v22, %v6231_v27  ;;  %5160 = vmatprep.mubr.msk.f32.mxu1 %vm5518_vm13, %v5516_v50  ;;  %5316 = vmatprep.subr.bf16.mxu1 %v5315_v8 }
0x1030   :  { %v3260_v38 = vmul.f32 %v5480_v3, %v6233_v28 }
0x1031   :  { %5166 = vmatmul.mubr.msk.f32.vlgmr.msra.gmra.mrb[38].mxu0 %vm1126_vm0, %v3262_v4 }
0x1032   :  { %5161 = vmatmul.mubr.msk.f32.vlgmr.msra.gmra.mrb[50].mxu1 %vm1126_vm0, %v3260_v38 }
0x1033   :  { %5318 = vmatpush3.bf16.msra.mxu1 %v5315_v8 }
0x1034   :  { %5320 = vmatprep.subr.bf16.mxu1 %v5319_v15 }
0x10a3   :  { %v3411_v14 = vpop.f32.mrb[32].mxu0 }
0x10a4   :  { %v3335_v30 = vpop.f32.mrb[44].mxu1  ;;  %v5137_v35 = vpop.f32.mrb[33].mxu0 }
0x10a5   :  { %v5132_v10 = vpop.f32.mrb[45].mxu1  ;;  %5172 = vmatprep.mubr.msk.f32.mxu1 %vm463_vm14, %v3335_v30  ;;  %v4660_v35 = vld [vmem:[%s6425_s6 + $0x30] sm:$0xff] }
0x10a6   :  { %5173 = vmatmul.mubr.msk.f32.vlgmr.msra.gmra.mrb[52].mxu1 %vm463_vm14, %v3411_v14  ;;  %v4659_v14 = vld [vmem:[%s6425_s6 + $0x28] sm:$0xff]  ;;  %v4661_v10 = vld [vmem:[%s6425_s6 + $0x38] sm:$0xff] }
0x10a7   :  { %v3563_v39 = vpop.f32.mrb[34].mxu0  ;;  %5322 = vmatpush3.bf16.msra.mxu1 %v5319_v15  ;;  %v4658_v15 = vld [vmem:[%s6425_s6 + $0x20] sm:$0xff] }
0x10a8   :  { %v3487_v18 = vpop.f32.mrb[46].mxu1  ;;  %v5147_v11 = vpop.f32.mrb[35].mxu0  ;;  %v5323_v30 = vpack.c.bf16 %v4659_v14, %v4658_v15 }
0x10a9   :  { %v5142_v21 = vpop.f32.mrb[47].mxu1  ;;  %5175 = vmatprep.mubr.msk.f32.mxu1 %vm463_vm14, %v3487_v18 }
0x10aa   :  { %5176 = vmatmul.mubr.msk.f32.gmra.mrb[54].mxu1 %vm463_vm14, %v3563_v39  ;;  %5324 = vmatprep.subr.bf16.mxu0 %v5323_v30  ;;  %v5327_v39 = vpack.c.bf16 %v4661_v10, %v4660_v35 }
0x10ab   :  { %5326 = vmatpush3.bf16.msra.mxu0 %v5323_v30 }
0x10ac   :  { %5328 = vmatprep.subr.bf16.mxu0 %v5327_v39 }
0x10af   :  { %5330 = vmatpush3.bf16.msra.mxu0 %v5327_v39 }
0x10ff   :  { %v3715_v52 = vpop.f32.mrb[36].mxu0 }
0x1100   :  { %v3639_v27 = vpop.f32.mrb[48].mxu1  ;;  %v5157_v28 = vpop.f32.mrb[37].mxu0 }
0x1101   :  { %v5152_v31 = vpop.f32.mrb[49].mxu1  ;;  %5182 = vmatprep.mubr.msk.f32.mxu1 %vm463_vm14, %v3639_v27 }
0x1102   :  { %5183 = vmatmul.mubr.msk.f32.vlgmr.msra.gmra.mrb[52].mxu1 %vm463_vm14, %v3715_v52 }
0x1104   :  { %v3867_v32 = vpop.f32.mrb[38].mxu0 }
0x1105   :  { %v3791_v40 = vpop.f32.mrb[50].mxu1  ;;  %v5167_v41 = vpop.f32.mrb[39].mxu0 }
0x1106   :  { %v5162_v42 = vpop.f32.mrb[51].mxu1  ;;  %5185 = vmatprep.mubr.msk.f32.mxu1 %vm463_vm14, %v3791_v40 }
0x1107   :  { %5186 = vmatmul.mubr.msk.f32.gmra.mrb[54].mxu1 %vm463_vm14, %v3867_v32 }
0x1108   :  { %5232 = vmatprep.mubr.msk.f32.mxu1 %vm5518_vm13, %v5516_v50 }
0x11d5   :  { %v5184_v5 = vpop.f32.mrb[52].mxu1 }
0x11d6   :  { %v5361_v20 = vadd.f32 %v5184_v5, %v3971_v12  ;;  %v4054_v24 = vpop.f32.mrb[53].mxu1  ;;  %v4136_v5 = vrot.slane %v6097_v6, %v5973_v56 }
0x11d7   :  { %v5362_v46 = vadd.f32 %v4054_v24, %v3971_v12 }
0x11d8   :  { %v4078_v47 = vadd.f32 %v5361_v20, %v6078_v63 }
0x11d9   :  { %v4077_v7 = vadd.f32 %v5362_v46, %v6076_v45 }
0x11da   :  { %v5187_v54 = vpop.f32.mrb[54].mxu1  ;;  %v4084_v55 = vsel %vm190_vm12, %v4078_v47, 0.0 }
0x11db   :  { %v5363_v43 = vadd.f32 %v5187_v54, %v3971_v12  ;;  %4085 = vadd.xlane.f32.xlu0 %v4084_v55  ;;  %v4064_v44 = vpop.f32.mrb[55].mxu1  ;;  %v4081_v19 = vsel %vm190_vm12, %v4077_v7, 0.0 }
0x11dc   :  { %v5364_v50 = vadd.f32 %v4064_v44, %v3971_v12  ;;  %4082 = vadd.xlane.f32.xlu1 %v4081_v19 }
0x11dd   :  { %v4080_v61 = vadd.f32 %v5363_v43, %v6086_v36 }
0x11de   :  { %v4079_v59 = vadd.f32 %v5364_v50, %v6084_v2 }
0x11df   :  { %v4090_v9 = vsel %vm190_vm12, %v4080_v61, 0.0 }
0x11e0   :  { %4091 = vadd.xlane.f32.xlu1 %v4090_v9  ;;  %v4087_v63 = vsel %vm190_vm12, %v4079_v59, 0.0 }
0x11e1   :  { %4088 = vadd.xlane.f32.xlu0 %v4087_v63 }
0x1268   :  { %v4086_v45 = vpop.xlane.xlu0 %4085 }
0x1269   :  { %v4094_v25 = vmul.f32 0.03125, %v4086_v45  ;;  %v4083_v13 = vpop.xlane.xlu1 %4082 }
0x126a   :  { %v4093_v58 = vmul.f32 0.03125, %v4083_v13  ;;  %v4663_v13 = vld [vmem:[%s6426_s7 + $0x48] sm:$0xff] }
0x126b   :  { %v4098_v16 = vsub.f32 %v4078_v47, %v4094_v25  ;;  %v4662_v25 = vld [vmem:[%s6426_s7 + $0x40] sm:$0xff] }
0x126c   :  { %v4097_v62 = vsub.f32 %v4077_v7, %v4093_v58  ;;  %v4144_v7 = vrot.slane %v6097_v6, %v2095_v0  ;;  %v5331_v58 = vpack.c.bf16 %v4663_v13, %v4662_v25 }
0x126d   :  { %v4092_v48 = vpop.xlane.xlu1 %4091  ;;  %v4102_v57 = vmul.f32 %v4098_v16, %v4098_v16 }
0x126e   :  { %v4096_v53 = vmul.f32 0.03125, %v4092_v48  ;;  %v4089_v8 = vpop.xlane.xlu0 %4088  ;;  %v4101_v37 = vmul.f32 %v4097_v62, %v4097_v62  ;;  %5332 = vmatprep.subr.bf16.mxu0 %v5331_v58 }
0x126f   :  { %v4095_v36 = vmul.f32 0.03125, %v4089_v8  ;;  %v4108_v2 = vsel %vm190_vm12, %v4102_v57, 0.0  ;;  %v4666_v57 = vld [vmem:[%s6426_s7 + $0x60] sm:$0xff] }
0x1270   :  { %v4100_v1 = vsub.f32 %v4080_v61, %v4096_v53  ;;  %4109 = vadd.xlane.f32.xlu1 %v4108_v2  ;;  %v4105_v29 = vsel %vm190_vm12, %v4101_v37, 0.0  ;;  %v4667_v53 = vld [vmem:[%s6426_s7 + $0x68] sm:$0xff]  ;;  %v4668_v37 = vld [vmem:[%s6426_s7 + $0x70] sm:$0xff] }
0x1271   :  { %v4099_v49 = vsub.f32 %v4079_v59, %v4095_v36  ;;  %4106 = vadd.xlane.f32.xlu0 %v4105_v29  ;;  %v5339_v8 = vpack.c.bf16 %v4667_v53, %v4666_v57  ;;  %v4669_v36 = vld [vmem:[%s6426_s7 + $0x78] sm:$0xff] }
0x1272   :  { %v4104_v22 = vmul.f32 %v4100_v1, %v4100_v1  ;;  %v5343_v2 = vpack.c.bf16 %v4669_v36, %v4668_v37 }
0x1273   :  { %v4103_v3 = vmul.f32 %v4099_v49, %v4099_v49 }
0x1274   :  { %v4114_v4 = vsel %vm190_vm12, %v4104_v22, 0.0 }
0x1275   :  { %4115 = vadd.xlane.f32.xlu1 %v4114_v4  ;;  %v4111_v38 = vsel %vm190_vm12, %v4103_v3, 0.0 }
0x1276   :  { %4112 = vadd.xlane.f32.xlu0 %v4111_v38 }
0x12fd   :  { %v4110_v18 = vpop.xlane.xlu1 %4109 }
0x12fe   :  { %v4118_v11 = vmul.f32 0.03125, %v4110_v18  ;;  %v4107_v21 = vpop.xlane.xlu0 %4106 }
0x12ff   :  { %v4117_v52 = vmul.f32 0.03125, %v4107_v21 }
0x1300   :  { %v4122_v27 = vadd.f32 1e-12, %v4118_v11 }
0x1301   :  { %v4121_v28 = vadd.f32 1e-12, %v4117_v52 }
0x1302   :  { %5481 = vrsqrt.f32 %v4122_v27  ;;  %v4116_v31 = vpop.xlane.xlu1 %4115 }
0x1303   :  { %5483 = vrsqrt.f32 %v4121_v28  ;;  %v4120_v32 = vmul.f32 0.03125, %v4116_v31  ;;  %v4113_v40 = vpop.xlane.xlu0 %4112 }
0x1304   :  { %v4119_v41 = vmul.f32 0.03125, %v4113_v40 }
0x1305   :  { %v4124_v42 = vadd.f32 1e-12, %v4120_v32 }
0x1306   :  { %v4123_v12 = vadd.f32 1e-12, %v4119_v41 }
0x1307   :  { %5485 = vrsqrt.f32 %v4124_v42 }
0x1308   :  { %5487 = vrsqrt.f32 %v4123_v12 }
0x130c   :  { %v5482_v20 = vpop.eup %5481 }
0x130d   :  { %v5484_v24 = vpop.eup %5483  ;;  %v4130_v46 = vmul.f32 %v5482_v20, %v4098_v16  ;;  %v4664_v16 = vld [vmem:[%s6426_s7 + $0x50] sm:$0xff] }
0x130e   :  { %v4129_v47 = vmul.f32 %v5484_v24, %v4097_v62  ;;  %v4665_v62 = vld [vmem:[%s6426_s7 + $0x58] sm:$0xff] }
0x130f   :  { %v4138_v54 = vmul.f32 %v4136_v5, %v4130_v46  ;;  %v5335_v48 = vpack.c.bf16 %v4665_v62, %v4664_v16 }
0x1310   :  { %v4137_v55 = vmul.f32 %v4136_v5, %v4129_v47 }
0x1311   :  { %v5486_v43 = vpop.eup %5485  ;;  %v6326_v61 = vadd.f32 %v4144_v7, %v4138_v54 }
0x1312   :  { %v5488_v44 = vpop.eup %5487  ;;  %v6324_v19 = vadd.f32 %v4144_v7, %v4137_v55  ;;  %v4132_v50 = vmul.f32 %v5486_v43, %v4100_v1  ;;  %v4152_v1 = vrot.slane %v6097_v6, %v6023_v33 }
0x1313   :  { %v4131_v59 = vmul.f32 %v5488_v44, %v4099_v49 }
0x1314   :  { %5196 = vmatprep.mubr.msk.f32.mxu0 %vm190_vm12, %v6324_v19  ;;  %v4140_v9 = vmul.f32 %v4136_v5, %v4132_v50 }
0x1315   :  { %5197 = vmatmul.mubr.msk.f32.vlgmr.msra.gmra.mrb[40].mxu0 %vm190_vm12, %v6326_v61  ;;  %v4139_v63 = vmul.f32 %v4136_v5, %v4131_v59 }
0x1316   :  { %v6334_v0 = vadd.f32 %v4144_v7, %v4140_v9  ;;  %5334 = vmatpush3.bf16.msra.mxu0 %v5331_v58 }
0x1317   :  { %v6332_v45 = vadd.f32 %v4144_v7, %v4139_v63  ;;  %5336 = vmatprep.subr.bf16.mxu0 %v5335_v48 }
0x1319   :  { %5199 = vmatprep.mubr.msk.f32.mxu0 %vm190_vm12, %v6332_v45 }
0x131a   :  { %5200 = vmatmul.mubr.msk.f32.gmra.mrb[42].mxu0 %vm190_vm12, %v6334_v0 }
0x131b   :  { %5338 = vmatpush3.bf16.msra.mxu0 %v5335_v48 }
0x131c   :  { %5340 = vmatprep.subr.bf16.mxu0 %v5339_v8 }
0x131f   :  { %5342 = vmatpush3.bf16.msra.mxu0 %v5339_v8  ;;  %v4289_v8 = vrot.slane %v6097_v6, %v6034_v34 }
0x1320   :  { %5344 = vmatprep.subr.bf16.mxu0 %v5343_v2 }
0x1323   :  { %5346 = vmatpush3.bf16.msra.mxu0 %v5343_v2 }
0x13e8   :  { %v5198_v29 = vpop.f32.mrb[40].mxu0 }
0x13e9   :  { %v4237_v49 = vadd.f32 %v5198_v29, %v4152_v1  ;;  %v4231_v22 = vpop.f32.mrb[41].mxu0 }
0x13ea   :  { %v4232_v3 = vadd.f32 %v4231_v22, %v4152_v1 }
0x13eb   :  { %v4255_v4 = vmul.f32 0.044715, %v4237_v49  ;;  %v4251_v44 = vmul.f32 0.5, %v4237_v49 }
0x13ec   :  { %v4254_v38 = vmul.f32 0.044715, %v4232_v3  ;;  %v4250_v55 = vmul.f32 0.5, %v4232_v3 }
0x13ed   :  { %v4259_v15 = vmul.f32 %v4255_v4, %v4237_v49  ;;  %v5201_v14 = vpop.f32.mrb[42].mxu0 }
0x13ee   :  { %v4258_v30 = vmul.f32 %v4254_v38, %v4232_v3  ;;  %v4247_v35 = vadd.f32 %v5201_v14, %v4152_v1  ;;  %v4241_v10 = vpop.f32.mrb[43].mxu0 }
0x13ef   :  { %v4263_v39 = vmul.f32 %v4259_v15, %v4237_v49  ;;  %v4242_v18 = vadd.f32 %v4241_v10, %v4152_v1 }
0x13f0   :  { %v4262_v11 = vmul.f32 %v4258_v30, %v4232_v3  ;;  %v4257_v21 = vmul.f32 0.044715, %v4247_v35  ;;  %v4253_v16 = vmul.f32 0.5, %v4247_v35 }
0x13f1   :  { %v4267_v52 = vadd.f32 %v4263_v39, %v4237_v49  ;;  %v4256_v27 = vmul.f32 0.044715, %v4242_v18  ;;  %v4252_v13 = vmul.f32 0.5, %v4242_v18 }
0x13f2   :  { %v4266_v28 = vadd.f32 %v4262_v11, %v4232_v3  ;;  %v4261_v31 = vmul.f32 %v4257_v21, %v4247_v35 }
0x13f3   :  { %v4271_v32 = vmul.f32 0.7978846, %v4267_v52  ;;  %v4260_v40 = vmul.f32 %v4256_v27, %v4242_v18 }
0x13f4   :  { %v4265_v41 = vmul.f32 %v4261_v31, %v4247_v35  ;;  %v4270_v42 = vmul.f32 0.7978846, %v4266_v28 }
0x13f5   :  { %5489 = vtanh.f32 %v4271_v32  ;;  %v4264_v12 = vmul.f32 %v4260_v40, %v4242_v18 }
0x13f6   :  { %v4269_v5 = vadd.f32 %v4265_v41, %v4247_v35  ;;  %5491 = vtanh.f32 %v4270_v42 }
0x13f7   :  { %v4268_v20 = vadd.f32 %v4264_v12, %v4242_v18 }
0x13f8   :  { %v4273_v24 = vmul.f32 0.7978846, %v4269_v5 }
0x13f9   :  { %v4272_v46 = vmul.f32 0.7978846, %v4268_v20  ;;  %v4462_v20 = vld [vmem:[%s6427_s9] sm:$0xff] }
0x13fa   :  { %5493 = vtanh.f32 %v4273_v24  ;;  %v4463_v24 = vld [vmem:[%s6427_s9 + $0x8] sm:$0xff] }
0x13fb   :  { %5495 = vtanh.f32 %v4272_v46  ;;  %v5348_v46 = vpack.c.bf16 %v4463_v24, %v4462_v20 }
0x13ff   :  { %v5490_v47 = vpop.eup %5489 }
0x1400   :  { %v5492_v7 = vpop.eup %5491  ;;  %v4279_v54 = vadd.f32 1.0, %v5490_v47  ;;  %v5523_v47 = vmov 0.0|0.0  }
0x1401   :  { %v4278_v43 = vadd.f32 1.0, %v5492_v7  ;;  %5347 = vmatprep.subr.bf16.mxu1 %v5523_v47  ;;  %v4464_v7 = vld [vmem:[%s6427_s9 + $0x10] sm:$0xff] }
0x1402   :  { %v4283_v9 = vmul.f32 %v4279_v54, %v4251_v44  ;;  %v4465_v54 = vld [vmem:[%s6427_s9 + $0x18] sm:$0xff]  ;;  %5349 = vmatpush3.bf16.msra.mxu1 %v5348_v46 }
0x1403   :  { %v4282_v50 = vmul.f32 %v4278_v43, %v4250_v55  ;;  %v5351_v55 = vpack.c.bf16 %v4465_v54, %v4464_v7  ;;  %5350 = vmatprep.subr.bf16.mxu1 %v5523_v47 }
0x1404   :  { %v5494_v59 = vpop.eup %5493 }
0x1405   :  { %v5496_v63 = vpop.eup %5495  ;;  %5218 = vmatprep.mubr.msk.f32.mxu0 %vm2242_vm1, %v4282_v50  ;;  %v4281_v25 = vadd.f32 1.0, %v5494_v59 }
0x1406   :  { %5219 = vmatmul.mubr.msk.f32.vlgmr.msra.gmra.mrb[44].mxu0 %vm2242_vm1, %v4283_v9  ;;  %v4280_v58 = vadd.f32 1.0, %v5496_v63  ;;  %5352 = vmatpush3.bf16.msra.mxu1 %v5351_v55 }
0x1407   :  { %v4285_v48 = vmul.f32 %v4281_v25, %v4253_v16 }
0x1408   :  { %v4284_v62 = vmul.f32 %v4280_v58, %v4252_v13 }
0x140a   :  { %5221 = vmatprep.mubr.msk.f32.mxu0 %vm2242_vm1, %v4284_v62 }
0x140b   :  { %5222 = vmatmul.mubr.msk.f32.gmra.mrb[46].mxu0 %vm2242_vm1, %v4285_v48 }
0x14d9   :  { %v5220_v57 = vpop.f32.mrb[44].mxu0 }
0x14da   :  { %v4368_v53 = vpop.f32.mrb[45].mxu0  ;;  %v4374_v36 = vadd.f32 %v5220_v57, %v4289_v8  ;;  %v5512_v57 = vld [vmem:[%s6422_s8 + $0x8] sm:$0xff] }
0x14db   :  { %v4369_v29 = vadd.f32 %v4368_v53, %v4289_v8  ;;  %v4446_v53 = vrot.slane %v5512_v57, %v2398_v60 }
0x14dc   :  { %v4388_v4 = vadd.f32 %v4374_v36, %v6326_v61  ;;  %v4454_v36 = vrot.slane %v5512_v57, %v2406_v51  ;;  %v4459_v51 = vld [vmem:[%s6428_s10] sm:$0x1f] }
0x14dd   :  { %v4387_v15 = vadd.f32 %v4369_v29, %v6324_v19  ;;  %v4571_v20 = vrot.slane %v4459_v51, %v6023_v33  ;;  %v4576_v46 = vrot.slane %v4459_v51, %v6034_v34  ;;  %v4584_v55 = vrot.slane %v4459_v51, %v5973_v56 }
0x14de   :  { %v5223_v37 = vpop.f32.mrb[46].mxu0  ;;  %v4394_v6 = vsel %vm190_vm12, %v4388_v4, 0.0 }
0x14df   :  { %v4384_v2 = vadd.f32 %v5223_v37, %v4289_v8  ;;  %v4378_v1 = vpop.f32.mrb[47].mxu0  ;;  %v4391_v30 = vsel %vm190_vm12, %v4387_v15, 0.0 }
0x14e0   :  { %v4379_v49 = vadd.f32 %v4378_v1, %v4289_v8 }
0x14e1   :  { %v4390_v22 = vadd.f32 %v4384_v2, %v6334_v0 }
0x14e2   :  { %v4389_v3 = vadd.f32 %v4379_v49, %v6332_v45 }
0x14e3   :  { %v4400_v38 = vsel %vm190_vm12, %v4390_v22, 0.0 }
0x14e4   :  { %4401 = vadd.xlane.f32.xlu1 %v4400_v38  ;;  %v4397_v14 = vsel %vm190_vm12, %v4389_v3, 0.0 }
0x14e5   :  { %4398 = vadd.xlane.f32.xlu0 %v4397_v14 }
0x14e8   :  { %4395 = vadd.xlane.f32.xlu1 %v4394_v6 }
0x14e9   :  { %4392 = vadd.xlane.f32.xlu0 %v4391_v30 }
0x1571   :  { %v4402_v35 = vpop.xlane.xlu1 %4401 }
0x1572   :  { %v4406_v0 = vmul.f32 0.03125, %v4402_v35  ;;  %v4399_v10 = vpop.xlane.xlu0 %4398 }
0x1573   :  { %v4405_v45 = vmul.f32 0.03125, %v4399_v10 }
0x1574   :  { %v4410_v39 = vsub.f32 %v4390_v22, %v4406_v0 }
0x1575   :  { %v4409_v61 = vsub.f32 %v4389_v3, %v4405_v45  ;;  %v4396_v18 = vpop.xlane.xlu1 %4395 }
0x1576   :  { %v4404_v11 = vmul.f32 0.03125, %v4396_v18  ;;  %v4393_v21 = vpop.xlane.xlu0 %4392  ;;  %v4414_v19 = vmul.f32 %v4410_v39, %v4410_v39 }
0x1577   :  { %v4403_v52 = vmul.f32 0.03125, %v4393_v21  ;;  %v4413_v27 = vmul.f32 %v4409_v61, %v4409_v61 }
0x1578   :  { %v4408_v28 = vsub.f32 %v4388_v4, %v4404_v11  ;;  %v4424_v31 = vsel %vm190_vm12, %v4414_v19, 0.0 }
0x1579   :  { %v4407_v32 = vsub.f32 %v4387_v15, %v4403_v52  ;;  %4425 = vadd.xlane.f32.xlu1 %v4424_v31  ;;  %v4421_v40 = vsel %vm190_vm12, %v4413_v27, 0.0 }
0x157a   :  { %4422 = vadd.xlane.f32.xlu0 %v4421_v40  ;;  %v4412_v41 = vmul.f32 %v4408_v28, %v4408_v28 }
0x157b   :  { %v4411_v42 = vmul.f32 %v4407_v32, %v4407_v32 }
0x157c   :  { %v4418_v12 = vsel %vm190_vm12, %v4412_v41, 0.0 }
0x157d   :  { %4419 = vadd.xlane.f32.xlu1 %v4418_v12  ;;  %v4415_v5 = vsel %vm190_vm12, %v4411_v42, 0.0 }
0x157e   :  { %4416 = vadd.xlane.f32.xlu0 %v4415_v5 }
0x1606   :  { %v4426_v43 = vpop.xlane.xlu1 %4425 }
0x1607   :  { %v4430_v44 = vmul.f32 0.03125, %v4426_v43  ;;  %v4423_v50 = vpop.xlane.xlu0 %4422 }
0x1608   :  { %v4429_v59 = vmul.f32 0.03125, %v4423_v50 }
0x1609   :  { %v4434_v9 = vadd.f32 1e-12, %v4430_v44 }
0x160a   :  { %v4433_v63 = vadd.f32 1e-12, %v4429_v59  ;;  %v4420_v25 = vpop.xlane.xlu1 %4419 }
0x160b   :  { %5497 = vrsqrt.f32 %v4434_v9  ;;  %v4428_v13 = vmul.f32 0.03125, %v4420_v25  ;;  %v4417_v58 = vpop.xlane.xlu0 %4416 }
0x160c   :  { %5499 = vrsqrt.f32 %v4433_v63  ;;  %v4427_v16 = vmul.f32 0.03125, %v4417_v58 }
0x160d   :  { %v4432_v62 = vadd.f32 1e-12, %v4428_v13 }
0x160e   :  { %v4431_v48 = vadd.f32 1e-12, %v4427_v16 }
0x160f   :  { %5501 = vrsqrt.f32 %v4432_v62 }
0x1610   :  { %5503 = vrsqrt.f32 %v4431_v48 }
0x1615   :  { %v5498_v8 = vpop.eup %5497 }
0x1616   :  { %v5500_v37 = vpop.eup %5499  ;;  %v4442_v2 = vmul.f32 %v5498_v8, %v4410_v39  ;;  %v4469_v39 = vrot.slane %v4459_v51, %v5669_v23  ;;  %v4566_v23 = vrot.slane %v4459_v51, %v5675_v26 }
0x1617   :  { %v4441_v1 = vmul.f32 %v5500_v37, %v4409_v61 }
0x1618   :  { %v4450_v29 = vmul.f32 %v4446_v53, %v4442_v2 }
0x1619   :  { %v5502_v49 = vpop.eup %5501  ;;  %v4449_v22 = vmul.f32 %v4446_v53, %v4441_v1 }
0x161a   :  { %v5504_v3 = vpop.eup %5503  ;;  %v4440_v4 = vmul.f32 %v5502_v49, %v4408_v28  ;;  %v4458_v38 = vadd.f32 %v4454_v36, %v4450_v29 }
0x161b   :  { %v4439_v15 = vmul.f32 %v5504_v3, %v4407_v32  ;;  %v4457_v14 = vadd.f32 %v4454_v36, %v4449_v22 }
0x161c   :  { %v4448_v6 = vmul.f32 %v4446_v53, %v4440_v4 }
0x161d   :  { %v4447_v30 = vmul.f32 %v4446_v53, %v4439_v15  ;;  %v4461_v35 = vmul.f32 %v4458_v38, %v4457_v14 }
0x161e   :  { %v4456_v0 = vadd.f32 %v4454_v36, %v4448_v6 }
0x161f   :  { %v4455_v60 = vadd.f32 %v4454_v36, %v4447_v30  ;;  %v4472_v45 = vrot.slane %v4461_v35, 7 }
0x1621   :  { %v4460_v10 = vmul.f32 %v4456_v0, %v4455_v60 }
0x1623   :  { %v4474_v17 = vsel %vm4473_vm2, %v4472_v45, %v4460_v10 }
0x1624   :  { %5233 = vmatmul.mubr.msk.f32.vlgmr.msra.gmra.mrb[56].mxu1 %vm190_vm12, %v4474_v17 }
0x16f7   :  { %v4543_v61 = vpop.f32.mrb[56].mxu1 }
0x16f8   :  { %v4544_v18 = vadd.f32 %v4543_v61, %v4469_v39  ;;  %v5234_v11 = vpop.f32.mrb[57].mxu1 }
0x16fa   :  { %v4547_v21 = vmax.f32 %v4544_v18, 0.0 }
0x16fc   :  { %v4549_v19 = vsel %vm4548_vm3, %v4547_v21, 0.0 }
0x16fd   :  { %4550 = vadd.xlane.f32.xlu0 %v4549_v19 }
0x178a   :  { %v4551_v52 = vpop.xlane.xlu0 %4550 }
0x178b   :  { %v4553_v27 = vmul.f32 0.0078125, %v4551_v52 }
0x178d   :  { %v4554_v28 = vsub.f32 %v4547_v21, %v4553_v27 }
0x178f   :  { %v4555_v31 = vmul.f32 %v4554_v28, %v4554_v28 }
0x1791   :  { %v4556_v32 = vsel %vm4548_vm3, %v4555_v31, 0.0 }
0x1792   :  { %4557 = vadd.xlane.f32.xlu1 %v4556_v32 }
0x181f   :  { %v4558_v40 = vpop.xlane.xlu1 %4557 }
0x1820   :  { %v4559_v41 = vmul.f32 0.0078125, %v4558_v40 }
0x1822   :  { %v4560_v42 = vadd.f32 1e-05, %v4559_v41 }
0x1824   :  { %5505 = vrsqrt.f32 %v4560_v42 }
0x182e   :  { %v5506_v12 = vpop.eup %5505 }
0x182f   :  { %v4562_v5 = vmul.f32 %v5506_v12, %v4554_v28 }
0x1831   :  { %v4567_v24 = vmul.f32 %v4566_v23, %v4562_v5 }
0x1833   :  { %v4572_v47 = vadd.f32 %v4571_v20, %v4567_v24 }
0x1835   :  { %v4577_v7 = vmul.f32 %v4576_v46, %v4572_v47 }
0x1837   :  { %v4578_v54 = vsel %vm4548_vm3, %v4577_v7, 0.0 }
0x1838   :  { %4579 = vadd.xlane.f32.xlu0 %v4578_v54 }
0x18c5   :  { %v4580_v43 = vpop.xlane.xlu0 %4579 }
0x18c6   :  { %v4585_v44 = vadd.f32 %v4584_v55, %v4580_v43 }
0x18c8   :  { %v4716_v50 = vmul.f32 -1.442695, %v4585_v44 }
0x18ca   :  { %5507 = vpow2.f32 %v4716_v50 }
0x18d4   :  { %v5508_v59 = vpop.eup %5507 }
0x18d5   :  { %v4589_v26 = vadd.f32 1.0, %v5508_v59 }
0x18d7   :  { %5509 = vrcp.f32 %v4589_v26 }
0x18e1   :  { %v5510_v9 = vpop.eup %5509 }
0x18e2   :  { %4593 = vst.msk [vmem:[%s6429_s11] sm:$0x3] %vm4592_vm4, %v5510_v9 }

</bundles_post_ra>
